<compile_context>
chip_gen: v6e
topology: v6e:2x2x1
jax: 0.10.0
libtpu: 0.0.40
codegen_flags: <defaults>
</compile_context>

<pallas_src>
import functools

import jax
import jax.numpy as jnp
import numpy as np
from jax.experimental import pallas as pl
from jax.experimental.pallas import tpu as pltpu

EPS = 1e-5

# MXU operand dtype for the grouped-conv matmuls (BN statistics and accumulation
# always stay in f32).  bf16 is the right choice on v5e (bf16-native MXU) and
# halves weight VMEM/HBM bytes everywhere; set to jnp.float32 for tighter numerics.
MATMUL_DTYPE = jnp.bfloat16


def fused_bn_relu_gconv_bn_kernel(x_ref, g1_ref, b1_ref, w_ref, g2_ref, b2_ref, o_ref):
    """One 128-channel cluster, fully fused in VMEM.

    x_ref : (N, 4, Hh, Wh, CB) f32, parity layout: x_ref[n, 2r+s, u, v, c] = x[n, c, 2u+r, 2v+s]
    w_ref : (9, CB, CB)        per-tap block-diagonal grouped-conv weight (MATMUL_DTYPE)
    g*/b* : (1, CB)            BN affine params of this cluster
    o_ref : (P, CB) f32        P = N*Hh*Wh, channel-last (lane-dense) conv+BN2 output
    """
    n, _, hh, wh, cb = x_ref.shape
    p = n * hh * wh

    # ---- BatchNorm2d #1 (training mode: batch statistics over N,H,W) + ReLU ----
    x = x_ref[...]
    mean1 = jnp.mean(x, axis=(0, 1, 2, 3), keepdims=True)
    var1 = jnp.mean((x - mean1) ** 2, axis=(0, 1, 2, 3), keepdims=True)   # biased
    inv1 = jax.lax.rsqrt(var1 + EPS)
    y = jnp.maximum((x - mean1) * inv1 * g1_ref[...] + b1_ref[...], 0.0)

    # ---- implicit im2col: tap(kh,kw)[n,i,j,:] == relu(bn(x))_padded[n, 2i+kh, 2j+kw, :]
    # Parity plane (r,s) holds original rows 2u+r / cols 2v+s, so every tap is a
    # static slice; only kh==0 / kw==0 read the zero padding -> shift with zero fill.
    zrow = jnp.zeros((n, 1, wh, cb), jnp.float32)
    zcol = jnp.zeros((n, hh, 1, cb), jnp.float32)

    def tap(kh, kw):
        a = y[:, 2 * (0 if kh == 1 else 1) + (0 if kw == 1 else 1)]       # (N,Hh,Wh,CB)
        if kh == 0:   # needs padded row -> shift down one output row, zero-fill top
            a = jnp.concatenate([zrow, a[:, : hh - 1]], axis=1)
        if kw == 0:   # needs padded col -> shift right one output col, zero-fill left
            a = jnp.concatenate([zcol, a[:, :, : wh - 1]], axis=2)
        return a.reshape(p, cb).astype(MATMUL_DTYPE)

    # ---- grouped 3x3 / stride-2 conv: 9 accumulating MXU dots, 128-wide output ----
    acc = jnp.zeros((p, cb), jnp.float32)
    for kh in range(3):
        for kw in range(3):
            acc = acc + jnp.dot(tap(kh, kw), w_ref[3 * kh + kw],
                                preferred_element_type=jnp.float32)

    # ---- BatchNorm2d #2 (training mode: batch statistics over N,Ho,Wo) ----
    mean2 = jnp.mean(acc, axis=0, keepdims=True)
    var2 = jnp.mean((acc - mean2) ** 2, axis=0, keepdims=True)            # biased
    inv2 = jax.lax.rsqrt(var2 + EPS)
    o_ref[...] = ((acc - mean2) * inv2 * g2_ref[...] + b2_ref[...]).astype(o_ref.dtype)


@functools.partial(jax.jit, static_argnames=("groups",))
def model_forward(x, gamma1, beta1, w, gamma2, beta2, *, groups):
    N, C, H, W = x.shape
    G = groups
    Cg = C // G
    assert H % 2 == 0 and W % 2 == 0, "k3/s2/p1 fused kernel assumes even H, W"

    # 128-channel clusters (4 groups of 32 for the real module) -> full lane width.
    CB = 128 if (C % 128 == 0 and 128 % Cg == 0) else Cg
    GC = CB // Cg                 # groups per cluster
    NC = C // CB                  # grid length (16 for the real module -> even, v7x-friendly)
    Hh, Wh = H // 2, W // 2       # == Ho, Wo
    P = N * Hh * Wh

    # ---- layout glue: one transpose into cluster/parity channel-last layout ----
    xg = x.reshape(N, NC, CB, Hh, 2, Wh, 2)
    xg = xg.transpose(1, 0, 4, 6, 3, 5, 2).reshape(NC, N, 4, Hh, Wh, CB)

    g1 = gamma1.reshape(NC, 1, CB)
    b1 = beta1.reshape(NC, 1, CB)
    g2 = gamma2.reshape(NC, 1, CB)
    b2 = beta2.reshape(NC, 1, CB)

    # PyTorch weight (Cout, Cin/G, 3, 3) -> per-cluster, per-tap block-diagonal
    # (CB, CB) operands so GC groups share one full-width MXU dot.
    w6 = w.reshape(NC, GC, Cg, Cg, 3, 3)              # (c, g, co, ci, kh, kw)
    wt = jnp.transpose(w6, (0, 4, 5, 1, 3, 2))        # (c, kh, kw, g, ci, co)
    eye = jnp.eye(GC, dtype=wt.dtype)
    wbd = jnp.einsum("ckwgio,gh->ckwgiho", wt, eye)   # (c, kh, kw, g, ci, h, co)
    wbd = wbd.reshape(NC, 9, CB, CB).astype(MATMUL_DTYPE)

    # ---- explicit VMEM budget (v7x has 64 MiB physical / 32 MiB default scoped) ----
    x_tile = N * 4 * Hh * Wh * CB * 4
    w_tile = 9 * CB * CB * jnp.dtype(MATMUL_DTYPE).itemsize
    o_tile = P * CB * 4
    vmem_limit = int(min(64 * 1024 * 1024,
                         max(32 * 1024 * 1024,
                             4 * (x_tile + w_tile + o_tile) + 8 * x_tile)))

    out = pl.pallas_call(
        fused_bn_relu_gconv_bn_kernel,
        out_shape=jax.ShapeDtypeStruct((NC, P, CB), jnp.float32),
        grid=(NC,),
        in_specs=[
            pl.BlockSpec((None, N, 4, Hh, Wh, CB), lambda c: (c, 0, 0, 0, 0, 0)),
            pl.BlockSpec((None, 1, CB), lambda c: (c, 0, 0)),
            pl.BlockSpec((None, 1, CB), lambda c: (c, 0, 0)),
            pl.BlockSpec((None, 9, CB, CB), lambda c: (c, 0, 0, 0)),
            pl.BlockSpec((None, 1, CB), lambda c: (c, 0, 0)),
            pl.BlockSpec((None, 1, CB), lambda c: (c, 0, 0)),
        ],
        out_specs=pl.BlockSpec((None, P, CB), lambda c: (c, 0, 0)),
        compiler_params=pltpu.CompilerParams(
            dimension_semantics=("parallel",),
            vmem_limit_bytes=vmem_limit,
        ),
    )(xg, g1, b1, wbd, g2, b2)

    # ---- back to NCHW ----
    return out.reshape(NC, N, Hh, Wh, CB).transpose(1, 0, 4, 2, 3).reshape(N, C, Hh, Wh)


def reference_forward(x, gamma1, beta1, w, gamma2, beta2, groups):
    """Pure-JAX f32 reference mirroring the PyTorch forward (training-mode BN)."""
    def bn(t, g, b):
        m = jnp.mean(t, axis=(0, 2, 3), keepdims=True)
        v = jnp.var(t, axis=(0, 2, 3), keepdims=True)          # biased
        return (t - m) / jnp.sqrt(v + EPS) * g.reshape(1, -1, 1, 1) + b.reshape(1, -1, 1, 1)

    y = jnp.maximum(bn(x, gamma1, beta1), 0.0)
    z = jax.lax.conv_general_dilated(
        y, w, window_strides=(2, 2), padding=((1, 1), (1, 1)),
        dimension_numbers=("NCHW", "OIHW", "NCHW"), feature_group_count=groups)
    return bn(z, gamma2, beta2)


if __name__ == "__main__":
    # Small shapes consistent with the module: Cg = C // G = 32 channels per group
    # (real module: 2048 ch / 64 groups), two 128-channel clusters -> even grid.
    N, C, H, W = 2, 256, 16, 16
    G = 8

    key = jax.random.PRNGKey(0)
    kx, kwt, k1, k2, k3, k4 = jax.random.split(key, 6)
    x = jax.random.normal(kx, (N, C, H, W), dtype=jnp.float32)
    w = jax.random.normal(kwt, (C, C // G, 3, 3), dtype=jnp.float32) * 0.05
    gamma1 = 1.0 + 0.1 * jax.random.normal(k1, (C,), dtype=jnp.float32)
    beta1 = 0.1 * jax.random.normal(k2, (C,), dtype=jnp.float32)
    gamma2 = 1.0 + 0.1 * jax.random.normal(k3, (C,), dtype=jnp.float32)
    beta2 = 0.1 * jax.random.normal(k4, (C,), dtype=jnp.float32)

    out = jax.block_until_ready(
        model_forward(x, gamma1, beta1, w, gamma2, beta2, groups=G))

    ref = reference_forward(x, gamma1, beta1, w, gamma2, beta2, G)
    Ho, Wo = H // 2, W // 2
    assert out.shape == ref.shape == (N, C, Ho, Wo)
    # bf16 MXU operands (f32 accumulation and f32 BN statistics): max abs error vs
    # the f32 reference is ~1e-2 at these scales; MATMUL_DTYPE=float32 gives <1e-4.
    if not np.allclose(np.asarray(out), np.asarray(ref), rtol=3e-2, atol=3e-2):
        err = float(np.max(np.abs(np.asarray(out) - np.asarray(ref))))
        raise AssertionError(f"Pallas output does not match reference (max abs err {err})")
    print("KERNEL_OK")
</pallas_src>

<mosaic_0001>
module attributes {stable_mosaic.version = 11 : i64} {
  func.func @fused_bn_relu_gconv_bn_kernel(%arg0: i32, %arg1: memref<1x2x4x8x8x128xf32, #tpu.memory_space<vmem>>, %arg2: memref<1x1x128xf32, #tpu.memory_space<vmem>>, %arg3: memref<1x1x128xf32, #tpu.memory_space<vmem>>, %arg4: memref<1x9x128x128xbf16, #tpu.memory_space<vmem>>, %arg5: memref<1x1x128xf32, #tpu.memory_space<vmem>>, %arg6: memref<1x1x128xf32, #tpu.memory_space<vmem>>, %arg7: memref<1x128x128xf32, #tpu.memory_space<vmem>>) attributes {dimension_semantics = [#tpu.dimension_semantics<parallel>], iteration_bounds = array<i64: 2>, scalar_prefetch = 0 : i64, scratch_operands = 0 : i64, tpu.core_type = #tpu.core_type<tc>, window_params = [{transform_indices = @transform_0, window_bounds = array<i64: 1, 2, 4, 8, 8, 128>}, {transform_indices = @transform_1, window_bounds = array<i64: 1, 1, 128>}, {transform_indices = @transform_2, window_bounds = array<i64: 1, 1, 128>}, {transform_indices = @transform_3, window_bounds = array<i64: 1, 9, 128, 128>}, {transform_indices = @transform_4, window_bounds = array<i64: 1, 1, 128>}, {transform_indices = @transform_5, window_bounds = array<i64: 1, 1, 128>}, {transform_indices = @transform_6, window_bounds = array<i64: 1, 128, 128>}]} {
    %c0 = arith.constant 0 : index
    %c0_0 = arith.constant 0 : index
    %c0_1 = arith.constant 0 : index
    %c0_2 = arith.constant 0 : index
    %c0_3 = arith.constant 0 : index
    %c0_4 = arith.constant 0 : index
    %0 = vector.load %arg1[%c0, %c0_0, %c0_1, %c0_2, %c0_3, %c0_4] : memref<1x2x4x8x8x128xf32, #tpu.memory_space<vmem>>, vector<1x2x4x8x8x128xf32>
    %1 = vector.shape_cast %0 : vector<1x2x4x8x8x128xf32> to vector<2x4x8x8x128xf32>
    %cst = arith.constant dense<0.000000e+00> : vector<128xf32>
    %2 = vector.multi_reduction <add>, %1, %cst [0, 1, 2, 3] : vector<2x4x8x8x128xf32> to vector<128xf32>
    %3 = vector.shape_cast %2 : vector<128xf32> to vector<1x1x1x1x128xf32>
    %cst_5 = arith.constant 5.120000e+02 : f32
    %4 = vector.broadcast %cst_5 : f32 to vector<1x1x1x1x128xf32>
    %5 = arith.divf %3, %4 : vector<1x1x1x1x128xf32>
    %6 = vector.broadcast %5 : vector<1x1x1x1x128xf32> to vector<2x4x8x8x128xf32>
    %7 = arith.subf %1, %6 : vector<2x4x8x8x128xf32>
    %8 = arith.mulf %7, %7 : vector<2x4x8x8x128xf32>
    %cst_6 = arith.constant dense<0.000000e+00> : vector<128xf32>
    %9 = vector.multi_reduction <add>, %8, %cst_6 [0, 1, 2, 3] : vector<2x4x8x8x128xf32> to vector<128xf32>
    %10 = vector.shape_cast %9 : vector<128xf32> to vector<1x1x1x1x128xf32>
    %cst_7 = arith.constant 5.120000e+02 : f32
    %11 = vector.broadcast %cst_7 : f32 to vector<1x1x1x1x128xf32>
    %12 = arith.divf %10, %11 : vector<1x1x1x1x128xf32>
    %cst_8 = arith.constant 9.99999974E-6 : f32
    %13 = vector.broadcast %cst_8 : f32 to vector<1x1x1x1x128xf32>
    %14 = arith.addf %12, %13 : vector<1x1x1x1x128xf32>
    %15 = math.rsqrt %14 : vector<1x1x1x1x128xf32>
    %16 = vector.broadcast %5 : vector<1x1x1x1x128xf32> to vector<2x4x8x8x128xf32>
    %17 = arith.subf %1, %16 : vector<2x4x8x8x128xf32>
    %18 = vector.broadcast %15 : vector<1x1x1x1x128xf32> to vector<2x4x8x8x128xf32>
    %19 = arith.mulf %17, %18 : vector<2x4x8x8x128xf32>
    %c0_9 = arith.constant 0 : index
    %c0_10 = arith.constant 0 : index
    %c0_11 = arith.constant 0 : index
    %20 = vector.load %arg2[%c0_9, %c0_10, %c0_11] : memref<1x1x128xf32, #tpu.memory_space<vmem>>, vector<1x1x128xf32>
    %21 = vector.shape_cast %20 : vector<1x1x128xf32> to vector<1x128xf32>
    %22 = vector.shape_cast %21 : vector<1x128xf32> to vector<1x1x1x1x128xf32>
    %23 = vector.broadcast %22 : vector<1x1x1x1x128xf32> to vector<2x4x8x8x128xf32>
    %24 = arith.mulf %19, %23 : vector<2x4x8x8x128xf32>
    %c0_12 = arith.constant 0 : index
    %c0_13 = arith.constant 0 : index
    %c0_14 = arith.constant 0 : index
    %25 = vector.load %arg3[%c0_12, %c0_13, %c0_14] : memref<1x1x128xf32, #tpu.memory_space<vmem>>, vector<1x1x128xf32>
    %26 = vector.shape_cast %25 : vector<1x1x128xf32> to vector<1x128xf32>
    %27 = vector.shape_cast %26 : vector<1x128xf32> to vector<1x1x1x1x128xf32>
    %28 = vector.broadcast %27 : vector<1x1x1x1x128xf32> to vector<2x4x8x8x128xf32>
    %29 = arith.addf %24, %28 : vector<2x4x8x8x128xf32>
    %cst_15 = arith.constant 0.000000e+00 : f32
    %30 = vector.broadcast %cst_15 : f32 to vector<2x4x8x8x128xf32>
    %31 = arith.maximumf %29, %30 : vector<2x4x8x8x128xf32>
    %cst_16 = arith.constant 0.000000e+00 : f32
    %32 = vector.broadcast %cst_16 : f32 to vector<2x1x8x128xf32>
    %cst_17 = arith.constant 0.000000e+00 : f32
    %33 = vector.broadcast %cst_17 : f32 to vector<2x8x1x128xf32>
    %cst_18 = arith.constant 0.000000e+00 : f32
    %34 = vector.broadcast %cst_18 : f32 to vector<128x128xf32>
    %35 = vector.extract_strided_slice %31 {offsets = [0, 3, 0, 0, 0], sizes = [2, 1, 8, 8, 128], strides = [1, 1, 1, 1, 1]} : vector<2x4x8x8x128xf32> to vector<2x1x8x8x128xf32>
    %36 = vector.shape_cast %35 : vector<2x1x8x8x128xf32> to vector<2x8x8x128xf32>
    %37 = vector.extract_strided_slice %36 {offsets = [0, 0, 0, 0], sizes = [2, 7, 8, 128], strides = [1, 1, 1, 1]} : vector<2x8x8x128xf32> to vector<2x7x8x128xf32>
    %38 = tpu.concatenate %32, %37 in 1 : vector<2x1x8x128xf32>, vector<2x7x8x128xf32> -> vector<2x8x8x128xf32>
    %39 = vector.extract_strided_slice %38 {offsets = [0, 0, 0, 0], sizes = [2, 8, 7, 128], strides = [1, 1, 1, 1]} : vector<2x8x8x128xf32> to vector<2x8x7x128xf32>
    %40 = tpu.concatenate %33, %39 in 2 : vector<2x8x1x128xf32>, vector<2x8x7x128xf32> -> vector<2x8x8x128xf32>
    %41 = vector.shape_cast %40 : vector<2x8x8x128xf32> to vector<128x128xf32>
    %42 = arith.truncf %41 : vector<128x128xf32> to vector<128x128xbf16>
    %c0_19 = arith.constant 0 : index
    %c0_20 = arith.constant 0 : index
    %c0_21 = arith.constant 0 : index
    %c0_22 = arith.constant 0 : index
    %43 = vector.load %arg4[%c0_19, %c0_20, %c0_21, %c0_22] : memref<1x9x128x128xbf16, #tpu.memory_space<vmem>>, vector<1x1x128x128xbf16>
    %44 = vector.shape_cast %43 : vector<1x1x128x128xbf16> to vector<128x128xbf16>
    %cst_23 = arith.constant dense<0.000000e+00> : vector<128x128xf32>
    %45 = tpu.matmul %42, %44, %cst_23 {dimension_numbers = #tpu.dot_dimension_numbers<[1], [0], [0], [1], [0, 0, 1, 1], [], []>} : vector<128x128xbf16>, vector<128x128xbf16>, vector<128x128xf32> -> vector<128x128xf32>
    %46 = arith.addf %34, %45 : vector<128x128xf32>
    %47 = vector.extract_strided_slice %31 {offsets = [0, 2, 0, 0, 0], sizes = [2, 1, 8, 8, 128], strides = [1, 1, 1, 1, 1]} : vector<2x4x8x8x128xf32> to vector<2x1x8x8x128xf32>
    %48 = vector.shape_cast %47 : vector<2x1x8x8x128xf32> to vector<2x8x8x128xf32>
    %49 = vector.extract_strided_slice %48 {offsets = [0, 0, 0, 0], sizes = [2, 7, 8, 128], strides = [1, 1, 1, 1]} : vector<2x8x8x128xf32> to vector<2x7x8x128xf32>
    %50 = tpu.concatenate %32, %49 in 1 : vector<2x1x8x128xf32>, vector<2x7x8x128xf32> -> vector<2x8x8x128xf32>
    %51 = vector.shape_cast %50 : vector<2x8x8x128xf32> to vector<128x128xf32>
    %52 = arith.truncf %51 : vector<128x128xf32> to vector<128x128xbf16>
    %c0_24 = arith.constant 0 : index
    %c1 = arith.constant 1 : index
    %c0_25 = arith.constant 0 : index
    %c0_26 = arith.constant 0 : index
    %53 = vector.load %arg4[%c0_24, %c1, %c0_25, %c0_26] : memref<1x9x128x128xbf16, #tpu.memory_space<vmem>>, vector<1x1x128x128xbf16>
    %54 = vector.shape_cast %53 : vector<1x1x128x128xbf16> to vector<128x128xbf16>
    %cst_27 = arith.constant dense<0.000000e+00> : vector<128x128xf32>
    %55 = tpu.matmul %52, %54, %cst_27 {dimension_numbers = #tpu.dot_dimension_numbers<[1], [0], [0], [1], [0, 0, 1, 1], [], []>} : vector<128x128xbf16>, vector<128x128xbf16>, vector<128x128xf32> -> vector<128x128xf32>
    %56 = arith.addf %46, %55 : vector<128x128xf32>
    %57 = vector.extract_strided_slice %31 {offsets = [0, 3, 0, 0, 0], sizes = [2, 1, 8, 8, 128], strides = [1, 1, 1, 1, 1]} : vector<2x4x8x8x128xf32> to vector<2x1x8x8x128xf32>
    %58 = vector.shape_cast %57 : vector<2x1x8x8x128xf32> to vector<2x8x8x128xf32>
    %59 = vector.extract_strided_slice %58 {offsets = [0, 0, 0, 0], sizes = [2, 7, 8, 128], strides = [1, 1, 1, 1]} : vector<2x8x8x128xf32> to vector<2x7x8x128xf32>
    %60 = tpu.concatenate %32, %59 in 1 : vector<2x1x8x128xf32>, vector<2x7x8x128xf32> -> vector<2x8x8x128xf32>
    %61 = vector.shape_cast %60 : vector<2x8x8x128xf32> to vector<128x128xf32>
    %62 = arith.truncf %61 : vector<128x128xf32> to vector<128x128xbf16>
    %c0_28 = arith.constant 0 : index
    %c2 = arith.constant 2 : index
    %c0_29 = arith.constant 0 : index
    %c0_30 = arith.constant 0 : index
    %63 = vector.load %arg4[%c0_28, %c2, %c0_29, %c0_30] : memref<1x9x128x128xbf16, #tpu.memory_space<vmem>>, vector<1x1x128x128xbf16>
    %64 = vector.shape_cast %63 : vector<1x1x128x128xbf16> to vector<128x128xbf16>
    %cst_31 = arith.constant dense<0.000000e+00> : vector<128x128xf32>
    %65 = tpu.matmul %62, %64, %cst_31 {dimension_numbers = #tpu.dot_dimension_numbers<[1], [0], [0], [1], [0, 0, 1, 1], [], []>} : vector<128x128xbf16>, vector<128x128xbf16>, vector<128x128xf32> -> vector<128x128xf32>
    %66 = arith.addf %56, %65 : vector<128x128xf32>
    %67 = vector.extract_strided_slice %31 {offsets = [0, 1, 0, 0, 0], sizes = [2, 1, 8, 8, 128], strides = [1, 1, 1, 1, 1]} : vector<2x4x8x8x128xf32> to vector<2x1x8x8x128xf32>
    %68 = vector.shape_cast %67 : vector<2x1x8x8x128xf32> to vector<2x8x8x128xf32>
    %69 = vector.extract_strided_slice %68 {offsets = [0, 0, 0, 0], sizes = [2, 8, 7, 128], strides = [1, 1, 1, 1]} : vector<2x8x8x128xf32> to vector<2x8x7x128xf32>
    %70 = tpu.concatenate %33, %69 in 2 : vector<2x8x1x128xf32>, vector<2x8x7x128xf32> -> vector<2x8x8x128xf32>
    %71 = vector.shape_cast %70 : vector<2x8x8x128xf32> to vector<128x128xf32>
    %72 = arith.truncf %71 : vector<128x128xf32> to vector<128x128xbf16>
    %c0_32 = arith.constant 0 : index
    %c3 = arith.constant 3 : index
    %c0_33 = arith.constant 0 : index
    %c0_34 = arith.constant 0 : index
    %73 = vector.load %arg4[%c0_32, %c3, %c0_33, %c0_34] : memref<1x9x128x128xbf16, #tpu.memory_space<vmem>>, vector<1x1x128x128xbf16>
    %74 = vector.shape_cast %73 : vector<1x1x128x128xbf16> to vector<128x128xbf16>
    %cst_35 = arith.constant dense<0.000000e+00> : vector<128x128xf32>
    %75 = tpu.matmul %72, %74, %cst_35 {dimension_numbers = #tpu.dot_dimension_numbers<[1], [0], [0], [1], [0, 0, 1, 1], [], []>} : vector<128x128xbf16>, vector<128x128xbf16>, vector<128x128xf32> -> vector<128x128xf32>
    %76 = arith.addf %66, %75 : vector<128x128xf32>
    %77 = vector.extract_strided_slice %31 {offsets = [0, 0, 0, 0, 0], sizes = [2, 1, 8, 8, 128], strides = [1, 1, 1, 1, 1]} : vector<2x4x8x8x128xf32> to vector<2x1x8x8x128xf32>
    %78 = vector.shape_cast %77 : vector<2x1x8x8x128xf32> to vector<2x8x8x128xf32>
    %79 = vector.shape_cast %78 : vector<2x8x8x128xf32> to vector<128x128xf32>
    %80 = arith.truncf %79 : vector<128x128xf32> to vector<128x128xbf16>
    %c0_36 = arith.constant 0 : index
    %c4 = arith.constant 4 : index
    %c0_37 = arith.constant 0 : index
    %c0_38 = arith.constant 0 : index
    %81 = vector.load %arg4[%c0_36, %c4, %c0_37, %c0_38] : memref<1x9x128x128xbf16, #tpu.memory_space<vmem>>, vector<1x1x128x128xbf16>
    %82 = vector.shape_cast %81 : vector<1x1x128x128xbf16> to vector<128x128xbf16>
    %cst_39 = arith.constant dense<0.000000e+00> : vector<128x128xf32>
    %83 = tpu.matmul %80, %82, %cst_39 {dimension_numbers = #tpu.dot_dimension_numbers<[1], [0], [0], [1], [0, 0, 1, 1], [], []>} : vector<128x128xbf16>, vector<128x128xbf16>, vector<128x128xf32> -> vector<128x128xf32>
    %84 = arith.addf %76, %83 : vector<128x128xf32>
    %85 = vector.extract_strided_slice %31 {offsets = [0, 1, 0, 0, 0], sizes = [2, 1, 8, 8, 128], strides = [1, 1, 1, 1, 1]} : vector<2x4x8x8x128xf32> to vector<2x1x8x8x128xf32>
    %86 = vector.shape_cast %85 : vector<2x1x8x8x128xf32> to vector<2x8x8x128xf32>
    %87 = vector.shape_cast %86 : vector<2x8x8x128xf32> to vector<128x128xf32>
    %88 = arith.truncf %87 : vector<128x128xf32> to vector<128x128xbf16>
    %c0_40 = arith.constant 0 : index
    %c5 = arith.constant 5 : index
    %c0_41 = arith.constant 0 : index
    %c0_42 = arith.constant 0 : index
    %89 = vector.load %arg4[%c0_40, %c5, %c0_41, %c0_42] : memref<1x9x128x128xbf16, #tpu.memory_space<vmem>>, vector<1x1x128x128xbf16>
    %90 = vector.shape_cast %89 : vector<1x1x128x128xbf16> to vector<128x128xbf16>
    %cst_43 = arith.constant dense<0.000000e+00> : vector<128x128xf32>
    %91 = tpu.matmul %88, %90, %cst_43 {dimension_numbers = #tpu.dot_dimension_numbers<[1], [0], [0], [1], [0, 0, 1, 1], [], []>} : vector<128x128xbf16>, vector<128x128xbf16>, vector<128x128xf32> -> vector<128x128xf32>
    %92 = arith.addf %84, %91 : vector<128x128xf32>
    %93 = vector.extract_strided_slice %31 {offsets = [0, 3, 0, 0, 0], sizes = [2, 1, 8, 8, 128], strides = [1, 1, 1, 1, 1]} : vector<2x4x8x8x128xf32> to vector<2x1x8x8x128xf32>
    %94 = vector.shape_cast %93 : vector<2x1x8x8x128xf32> to vector<2x8x8x128xf32>
    %95 = vector.extract_strided_slice %94 {offsets = [0, 0, 0, 0], sizes = [2, 8, 7, 128], strides = [1, 1, 1, 1]} : vector<2x8x8x128xf32> to vector<2x8x7x128xf32>
    %96 = tpu.concatenate %33, %95 in 2 : vector<2x8x1x128xf32>, vector<2x8x7x128xf32> -> vector<2x8x8x128xf32>
    %97 = vector.shape_cast %96 : vector<2x8x8x128xf32> to vector<128x128xf32>
    %98 = arith.truncf %97 : vector<128x128xf32> to vector<128x128xbf16>
    %c0_44 = arith.constant 0 : index
    %c6 = arith.constant 6 : index
    %c0_45 = arith.constant 0 : index
    %c0_46 = arith.constant 0 : index
    %99 = vector.load %arg4[%c0_44, %c6, %c0_45, %c0_46] : memref<1x9x128x128xbf16, #tpu.memory_space<vmem>>, vector<1x1x128x128xbf16>
    %100 = vector.shape_cast %99 : vector<1x1x128x128xbf16> to vector<128x128xbf16>
    %cst_47 = arith.constant dense<0.000000e+00> : vector<128x128xf32>
    %101 = tpu.matmul %98, %100, %cst_47 {dimension_numbers = #tpu.dot_dimension_numbers<[1], [0], [0], [1], [0, 0, 1, 1], [], []>} : vector<128x128xbf16>, vector<128x128xbf16>, vector<128x128xf32> -> vector<128x128xf32>
    %102 = arith.addf %92, %101 : vector<128x128xf32>
    %103 = vector.extract_strided_slice %31 {offsets = [0, 2, 0, 0, 0], sizes = [2, 1, 8, 8, 128], strides = [1, 1, 1, 1, 1]} : vector<2x4x8x8x128xf32> to vector<2x1x8x8x128xf32>
    %104 = vector.shape_cast %103 : vector<2x1x8x8x128xf32> to vector<2x8x8x128xf32>
    %105 = vector.shape_cast %104 : vector<2x8x8x128xf32> to vector<128x128xf32>
    %106 = arith.truncf %105 : vector<128x128xf32> to vector<128x128xbf16>
    %c0_48 = arith.constant 0 : index
    %c7 = arith.constant 7 : index
    %c0_49 = arith.constant 0 : index
    %c0_50 = arith.constant 0 : index
    %107 = vector.load %arg4[%c0_48, %c7, %c0_49, %c0_50] : memref<1x9x128x128xbf16, #tpu.memory_space<vmem>>, vector<1x1x128x128xbf16>
    %108 = vector.shape_cast %107 : vector<1x1x128x128xbf16> to vector<128x128xbf16>
    %cst_51 = arith.constant dense<0.000000e+00> : vector<128x128xf32>
    %109 = tpu.matmul %106, %108, %cst_51 {dimension_numbers = #tpu.dot_dimension_numbers<[1], [0], [0], [1], [0, 0, 1, 1], [], []>} : vector<128x128xbf16>, vector<128x128xbf16>, vector<128x128xf32> -> vector<128x128xf32>
    %110 = arith.addf %102, %109 : vector<128x128xf32>
    %111 = vector.extract_strided_slice %31 {offsets = [0, 3, 0, 0, 0], sizes = [2, 1, 8, 8, 128], strides = [1, 1, 1, 1, 1]} : vector<2x4x8x8x128xf32> to vector<2x1x8x8x128xf32>
    %112 = vector.shape_cast %111 : vector<2x1x8x8x128xf32> to vector<2x8x8x128xf32>
    %113 = vector.shape_cast %112 : vector<2x8x8x128xf32> to vector<128x128xf32>
    %114 = arith.truncf %113 : vector<128x128xf32> to vector<128x128xbf16>
    %c0_52 = arith.constant 0 : index
    %c8 = arith.constant 8 : index
    %c0_53 = arith.constant 0 : index
    %c0_54 = arith.constant 0 : index
    %115 = vector.load %arg4[%c0_52, %c8, %c0_53, %c0_54] : memref<1x9x128x128xbf16, #tpu.memory_space<vmem>>, vector<1x1x128x128xbf16>
    %116 = vector.shape_cast %115 : vector<1x1x128x128xbf16> to vector<128x128xbf16>
    %cst_55 = arith.constant dense<0.000000e+00> : vector<128x128xf32>
    %117 = tpu.matmul %114, %116, %cst_55 {dimension_numbers = #tpu.dot_dimension_numbers<[1], [0], [0], [1], [0, 0, 1, 1], [], []>} : vector<128x128xbf16>, vector<128x128xbf16>, vector<128x128xf32> -> vector<128x128xf32>
    %118 = arith.addf %110, %117 : vector<128x128xf32>
    %cst_56 = arith.constant dense<0.000000e+00> : vector<128xf32>
    %119 = vector.multi_reduction <add>, %118, %cst_56 [0] : vector<128x128xf32> to vector<128xf32>
    %120 = vector.shape_cast %119 : vector<128xf32> to vector<1x128xf32>
    %cst_57 = arith.constant 1.280000e+02 : f32
    %121 = vector.broadcast %cst_57 : f32 to vector<1x128xf32>
    %122 = arith.divf %120, %121 : vector<1x128xf32>
    %123 = vector.broadcast %122 : vector<1x128xf32> to vector<128x128xf32>
    %124 = arith.subf %118, %123 : vector<128x128xf32>
    %125 = arith.mulf %124, %124 : vector<128x128xf32>
    %cst_58 = arith.constant dense<0.000000e+00> : vector<128xf32>
    %126 = vector.multi_reduction <add>, %125, %cst_58 [0] : vector<128x128xf32> to vector<128xf32>
    %127 = vector.shape_cast %126 : vector<128xf32> to vector<1x128xf32>
    %cst_59 = arith.constant 1.280000e+02 : f32
    %128 = vector.broadcast %cst_59 : f32 to vector<1x128xf32>
    %129 = arith.divf %127, %128 : vector<1x128xf32>
    %cst_60 = arith.constant 9.99999974E-6 : f32
    %130 = vector.broadcast %cst_60 : f32 to vector<1x128xf32>
    %131 = arith.addf %129, %130 : vector<1x128xf32>
    %132 = math.rsqrt %131 : vector<1x128xf32>
    %133 = vector.broadcast %122 : vector<1x128xf32> to vector<128x128xf32>
    %134 = arith.subf %118, %133 : vector<128x128xf32>
    %135 = vector.broadcast %132 : vector<1x128xf32> to vector<128x128xf32>
    %136 = arith.mulf %134, %135 : vector<128x128xf32>
    %c0_61 = arith.constant 0 : index
    %c0_62 = arith.constant 0 : index
    %c0_63 = arith.constant 0 : index
    %137 = vector.load %arg5[%c0_61, %c0_62, %c0_63] : memref<1x1x128xf32, #tpu.memory_space<vmem>>, vector<1x1x128xf32>
    %138 = vector.shape_cast %137 : vector<1x1x128xf32> to vector<1x128xf32>
    %139 = vector.broadcast %138 : vector<1x128xf32> to vector<128x128xf32>
    %140 = arith.mulf %136, %139 : vector<128x128xf32>
    %c0_64 = arith.constant 0 : index
    %c0_65 = arith.constant 0 : index
    %c0_66 = arith.constant 0 : index
    %141 = vector.load %arg6[%c0_64, %c0_65, %c0_66] : memref<1x1x128xf32, #tpu.memory_space<vmem>>, vector<1x1x128xf32>
    %142 = vector.shape_cast %141 : vector<1x1x128xf32> to vector<1x128xf32>
    %143 = vector.broadcast %142 : vector<1x128xf32> to vector<128x128xf32>
    %144 = arith.addf %140, %143 : vector<128x128xf32>
    %c0_67 = arith.constant 0 : index
    %c0_68 = arith.constant 0 : index
    %c0_69 = arith.constant 0 : index
    %145 = vector.load %arg7[%c0_67, %c0_68, %c0_69] : memref<1x128x128xf32, #tpu.memory_space<vmem>>, vector<1x128x128xf32>
    %146 = vector.shape_cast %145 : vector<1x128x128xf32> to vector<128x128xf32>
    %147 = vector.shape_cast %144 : vector<128x128xf32> to vector<1x128x128xf32>
    tpu.vector_store %arg7[%c0_67, %c0_68, %c0_69], %147 {strides = array<i32>} : memref<1x128x128xf32, #tpu.memory_space<vmem>>, vector<1x128x128xf32>,
    return
  }
  func.func @transform_0(%arg0: i32) -> (i32, i32, i32, i32, i32, i32) {
    %c0_i32 = arith.constant 0 : i32
    %c0_i32_0 = arith.constant 0 : i32
    %c0_i32_1 = arith.constant 0 : i32
    %c0_i32_2 = arith.constant 0 : i32
    %c0_i32_3 = arith.constant 0 : i32
    %c0_i32_4 = arith.constant 0 : i32
    return %arg0, %c0_i32, %c0_i32_0, %c0_i32_1, %c0_i32_2, %c0_i32_3 : i32, i32, i32, i32, i32, i32
  }
  func.func @transform_1(%arg0: i32) -> (i32, i32, i32) {
    %c0_i32 = arith.constant 0 : i32
    %c0_i32_0 = arith.constant 0 : i32
    %c0_i32_1 = arith.constant 0 : i32
    return %arg0, %c0_i32, %c0_i32_0 : i32, i32, i32
  }
  func.func @transform_2(%arg0: i32) -> (i32, i32, i32) {
    %c0_i32 = arith.constant 0 : i32
    %c0_i32_0 = arith.constant 0 : i32
    %c0_i32_1 = arith.constant 0 : i32
    return %arg0, %c0_i32, %c0_i32_0 : i32, i32, i32
  }
  func.func @transform_3(%arg0: i32) -> (i32, i32, i32, i32) {
    %c0_i32 = arith.constant 0 : i32
    %c0_i32_0 = arith.constant 0 : i32
    %c0_i32_1 = arith.constant 0 : i32
    %c0_i32_2 = arith.constant 0 : i32
    return %arg0, %c0_i32, %c0_i32_0, %c0_i32_1 : i32, i32, i32, i32
  }
  func.func @transform_4(%arg0: i32) -> (i32, i32, i32) {
    %c0_i32 = arith.constant 0 : i32
    %c0_i32_0 = arith.constant 0 : i32
    %c0_i32_1 = arith.constant 0 : i32
    return %arg0, %c0_i32, %c0_i32_0 : i32, i32, i32
  }
  func.func @transform_5(%arg0: i32) -> (i32, i32, i32) {
    %c0_i32 = arith.constant 0 : i32
    %c0_i32_0 = arith.constant 0 : i32
    %c0_i32_1 = arith.constant 0 : i32
    return %arg0, %c0_i32, %c0_i32_0 : i32, i32, i32
  }
  func.func @transform_6(%arg0: i32) -> (i32, i32, i32) {
    %c0_i32 = arith.constant 0 : i32
    %c0_i32_0 = arith.constant 0 : i32
    %c0_i32_1 = arith.constant 0 : i32
    return %arg0, %c0_i32, %c0_i32_0 : i32, i32, i32
  }
}

</mosaic_0001>

<bundles_post_ra>
// kernel: model_forward.1
= control target key start
LH: loop header
LB: loop body
LE: loop exit
PB: predicated region body
PF: predicated region fallthrough
CT: control target
= control target key end

     0   :  { %s3886_s21 = smov 0   ;;  %s5487_s0 = inlined_call_operand.vmem [shape: f32[2,2,4,8,8,128], index: 0, kind: input, shape index: {}]   ;;  %s5488_s1 = inlined_call_operand.vmem [shape: f32[2,1,128], index: 1, kind: input, shape index: {}]   ;;  %s5489_s2 = inlined_call_operand.vmem [shape: f32[2,1,128], index: 2, kind: input, shape index: {}]   ;;  %s5490_s3 = inlined_call_operand.vmem [shape: bf16[2,9,128,128], index: 3, kind: input, shape index: {}]   ;;  %s5491_s4 = inlined_call_operand.vmem [shape: f32[2,1,128], index: 4, kind: input, shape index: {}]   ;;  %s5492_s5 = inlined_call_operand.vmem [shape: f32[2,1,128], index: 5, kind: input, shape index: {}]   ;;  %s5493_s6 = inlined_call_operand.vmem [shape: f32[2,128,128], index: 6, kind: output, shape index: {}]  }
   0x1 LB: > { %s2968_s22 = sadd.s32 4294967295, %s3848_s21   ;;  %p2972_p0 = scmp.ge.s32.totalorder %s3848_s21, 1  ;;  %s3848_s21 = sphi %s3886_s21, %s16_s21  }
   0x2   : > { %p254_p1 = scmp.lt.s32.totalorder %s3848_s21, 3 }
   0x4   : > { %p255_p2 = pnand %p2972_p0, %p254_p1 }
   0x6   : > { %258 = sbr.rel (%p255_p2) target bundleno = 795 (0x31b), region = 44 }
   0xb   : > { %p301_p3 = scmp.lt.s32.totalorder %s2968_s22, 1  ;;  %vm979_vm0 = vcmask 1040384  }
   0xc   : > { %vm3012_vm1 = vmneg %vm979_vm0 }
   0xd   : > { %s5758_s22 = smov (!%p301_p3, %s2968_s22), 1  ;;  %vm4583_vm2 = vmpackc.low %vm3012_vm1, %vm3012_vm1 }
   0xe   : > { %s3754_s23 = smul.u32 576, %s5758_s22  ;;  %s3304_s24 = sshll.u32 %s5758_s22, 9 }
   0xf   : > { %s3908_s30 = scalar_lea.vmem %s5487_s0, %s3304_s24  ;;  %s4502_s9 = scalar_lea.vmem %s5488_s1, %s5758_s22 }
  0x10   : > { %s3901_s27 = scalar_lea.vmem %s5490_s3, %s3754_s23  ;;  %v3914_v5 = vld [vmem:[%s3908_s30] sm:$0xff]  ;;  %v3918_v7 = vld [vmem:[%s3908_s30 + $0x8] sm:$0xff]  ;;  %v3925_v11 = vld [vmem:[%s3908_s30 + $0x10] sm:$0xff]  ;;  %s4508_s12 = scalar_lea.vmem %s5489_s2, %s5758_s22 }
  0x11   : > { %v3764_v0 = vld [vmem:[%s3901_s27 + $0x78] sm:$0xff]   ;;  %v3766_v2 = vld [vmem:[%s3901_s27 + $0x70] sm:$0xff]   ;;  %v3768_v4 = vld [vmem:[%s3901_s27 + $0x68] sm:$0xff]   ;;  %v393_v10 = vadd.f32 %v3918_v7, %v3914_v5  ;;  %s319_s15 = scalar_lea.vmem %s5491_s4, %s5758_s22  ;;  %s322_s18 = scalar_lea.vmem %s5492_s5, %s5758_s22 }
  0x12   : > { %v3765_v1 = vld [vmem:[%s3901_s27 + $0x38] sm:$0xff]   ;;  %3450 = vmatprep.subr.bf16.mxu0 %v3764_v0  ;;  %v3767_v3 = vld [vmem:[%s3901_s27 + $0x30] sm:$0xff]   ;;  %v3769_v6 = vld [vmem:[%s3901_s27 + $0x28] sm:$0xff]   ;;  %s3305_s19 = sshll.u32 %s5758_s22, 7 }
  0x13   : > { %3451 = vmatpush3.bf16.msra.mxu0 %v3764_v0  ;;  %3482 = vmatprep.subr.bf16.mxu1 %v3765_v1  ;;  %v3770_v8 = vld [vmem:[%s3901_s27 + $0x60] sm:$0xff]   ;;  %v3772_v12 = vld [vmem:[%s3901_s27 + $0x58] sm:$0xff]   ;;  %v394_v14 = vadd.f32 %v393_v10, %v3925_v11  ;;  %v3774_v15 = vld [vmem:[%s3901_s27 + $0x50] sm:$0xff]   ;;  %s5466_s24 = scalar_lea.vmem %s5493_s6, %s3305_s19 }
  0x14   : > { %3452 = vmatprep.subr.bf16.mxu0 %v3766_v2  ;;  %3483 = vmatpush3.bf16.msra.mxu1 %v3765_v1  ;;  %v3771_v9 = vld [vmem:[%s3901_s27 + $0x20] sm:$0xff]   ;;  %v3773_v13 = vld [vmem:[%s3901_s27 + $0x18] sm:$0xff]   ;;  %v3775_v18 = vld [vmem:[%s3901_s27 + $0x10] sm:$0xff]  }
  0x15   : > { %3484 = vmatprep.subr.bf16.mxu1 %v3767_v3  ;;  %v3932_v16 = vld [vmem:[%s3908_s30 + $0x18] sm:$0xff]  ;;  %v3935_v17 = vld [vmem:[%s3908_s30 + $0x20] sm:$0xff]  ;;  %v3940_v20 = vld [vmem:[%s3908_s30 + $0x28] sm:$0xff] }
  0x16   : > { %v395_v19 = vadd.f32 %v394_v14, %v3932_v16  ;;  %v3776_v22 = vld [vmem:[%s3901_s27 + $0x48] sm:$0xff]   ;;  %v3945_v23 = vld [vmem:[%s3908_s30 + $0x30] sm:$0xff]  ;;  %v3950_v26 = vld [vmem:[%s3908_s30 + $0x38] sm:$0xff] }
  0x17   : > { %3453 = vmatpush3.bf16.msra.mxu0 %v3766_v2  ;;  %v3777_v24 = vld [vmem:[%s3901_s27 + $0x8] sm:$0xff]   ;;  %v3778_v28 = vld [vmem:[%s3901_s27 + $0x40] sm:$0xff]   ;;  %v3964_v34 = vld [vmem:[%s3908_s30 + $0x50] sm:$0xff] }
  0x18   : > { %3454 = vmatprep.subr.bf16.mxu0 %v3768_v4  ;;  %3485 = vmatpush3.bf16.msra.mxu1 %v3767_v3  ;;  %v396_v21 = vadd.f32 %v395_v19, %v3935_v17  ;;  %v3955_v29 = vld [vmem:[%s3908_s30 + $0x40] sm:$0xff]  ;;  %v3960_v32 = vld [vmem:[%s3908_s30 + $0x48] sm:$0xff]  ;;  %v3968_v36 = vld [vmem:[%s3908_s30 + $0x58] sm:$0xff] }
  0x19   : > { %3486 = vmatprep.subr.bf16.mxu1 %v3769_v6  ;;  %v3779_v30 = vld [vmem:[%s3901_s27] sm:$0xff]   ;;  %v3976_v40 = vld [vmem:[%s3908_s30 + $0x68] sm:$0xff]  ;;  %v3979_v41 = vld [vmem:[%s3908_s30 + $0x70] sm:$0xff] }
  0x1a   : > { %v397_v25 = vadd.f32 %v396_v21, %v3940_v20  ;;  %v3972_v38 = vld [vmem:[%s3908_s30 + $0x60] sm:$0xff]  ;;  %v3983_v43 = vld [vmem:[%s3908_s30 + $0x78] sm:$0xff]  ;;  %v3991_v47 = vld [vmem:[%s3908_s30 + $0x88] sm:$0xff] }
  0x1b   : > { %3455 = vmatpush3.bf16.msra.mxu0 %v3768_v4  ;;  %v3987_v45 = vld [vmem:[%s3908_s30 + $0x80] sm:$0xff]  ;;  %v3995_v49 = vld [vmem:[%s3908_s30 + $0x90] sm:$0xff]  ;;  %v3999_v51 = vld [vmem:[%s3908_s30 + $0x98] sm:$0xff] }
  0x1c   : > { %3456 = vmatprep.subr.bf16.mxu0 %v3770_v8  ;;  %3487 = vmatpush3.bf16.msra.mxu1 %v3769_v6  ;;  %v398_v27 = vadd.f32 %v397_v25, %v3945_v23  ;;  %v4003_v53 = vld [vmem:[%s3908_s30 + $0xa0] sm:$0xff]  ;;  %v4007_v55 = vld [vmem:[%s3908_s30 + $0xa8] sm:$0xff]  ;;  %v4011_v57 = vld [vmem:[%s3908_s30 + $0xb0] sm:$0xff] }
  0x1d   : > { %3488 = vmatprep.subr.bf16.mxu1 %v3771_v9  ;;  %v4015_v59 = vld [vmem:[%s3908_s30 + $0xb8] sm:$0xff]  ;;  %v4019_v61 = vld [vmem:[%s3908_s30 + $0xc0] sm:$0xff]  ;;  %v4023_v63 = vld [vmem:[%s3908_s30 + $0xc8] sm:$0xff] }
  0x1e   : > { %v399_v31 = vadd.f32 %v398_v27, %v3950_v26  ;;  %v4027_v1 = vld [vmem:[%s3908_s30 + $0xd0] sm:$0xff]  ;;  %v4031_v3 = vld [vmem:[%s3908_s30 + $0xd8] sm:$0xff]  ;;  %v4035_v6 = vld [vmem:[%s3908_s30 + $0xe0] sm:$0xff] }
  0x1f   : > { %3457 = vmatpush3.bf16.msra.mxu0 %v3770_v8  ;;  %v4047_v14 = vld [vmem:[%s3908_s30 + $0xf8] sm:$0xff]  ;;  %v4060_v25 = vld [vmem:[%s3908_s30 + $0x110] sm:$0xff] }
  0x20   : > { %3458 = vmatprep.subr.bf16.mxu0 %v3772_v12  ;;  %3489 = vmatpush3.bf16.msra.mxu1 %v3771_v9  ;;  %v400_v33 = vadd.f32 %v399_v31, %v3955_v29  ;;  %v4039_v9 = vld [vmem:[%s3908_s30 + $0xe8] sm:$0xff]  ;;  %5578 = vst [vmem:[#allocation3_spill] sm:$0xff] %v4047_v14  ;;  %5581 = vst [vmem:[#allocation6_spill] sm:$0xff] %v4060_v25  ;;  %v4068_v31 = vld [vmem:[%s3908_s30 + $0x120] sm:$0xff] }
  0x21   : > { %3490 = vmatprep.subr.bf16.mxu1 %v3773_v13  ;;  %5583 = vst [vmem:[#allocation8_spill] sm:$0xff] %v4068_v31 }
  0x22   : > { %v401_v35 = vadd.f32 %v400_v33, %v3960_v32 }
  0x23   : > { %3459 = vmatpush3.bf16.msra.mxu0 %v3772_v12  ;;  %v4043_v12 = vld [vmem:[%s3908_s30 + $0xf0] sm:$0xff] }
  0x24   : > { %3460 = vmatprep.subr.bf16.mxu0 %v3774_v15  ;;  %3491 = vmatpush3.bf16.msra.mxu1 %v3773_v13  ;;  %v402_v37 = vadd.f32 %v401_v35, %v3964_v34  ;;  %5577 = vst [vmem:[#allocation2_spill] sm:$0xff] %v4043_v12  ;;  %v4072_v35 = vld [vmem:[%s3908_s30 + $0x128] sm:$0xff] }
  0x25   : > { %3492 = vmatprep.subr.bf16.mxu1 %v3775_v18  ;;  %5584 = vst [vmem:[#allocation9_spill] sm:$0xff] %v4072_v35 }
  0x26   : > { %v403_v39 = vadd.f32 %v402_v37, %v3968_v36 }
  0x27   : > { %3461 = vmatpush3.bf16.msra.mxu0 %v3774_v15 }
  0x28   : > { %3462 = vmatprep.subr.bf16.mxu0 %v3776_v22  ;;  %3493 = vmatpush3.bf16.msra.mxu1 %v3775_v18  ;;  %v404_v42 = vadd.f32 %v403_v39, %v3972_v38  ;;  %v4051_v18 = vld [vmem:[%s3908_s30 + $0x100] sm:$0xff]  ;;  %v4076_v39 = vld [vmem:[%s3908_s30 + $0x130] sm:$0xff] }
  0x29   : > { %3494 = vmatprep.subr.bf16.mxu1 %v3777_v24  ;;  %5579 = vst [vmem:[#allocation4_spill] sm:$0xff] %v4051_v18  ;;  %5585 = vst [vmem:[#allocation10_spill] sm:$0xff] %v4076_v39 }
  0x2a   : > { %v405_v44 = vadd.f32 %v404_v42, %v3976_v40 }
  0x2b   : > { %3463 = vmatpush3.bf16.msra.mxu0 %v3776_v22  ;;  %v4056_v22 = vld [vmem:[%s3908_s30 + $0x108] sm:$0xff] }
  0x2c   : > { %3464 = vmatprep.subr.bf16.mxu0 %v3778_v28  ;;  %3495 = vmatpush3.bf16.msra.mxu1 %v3777_v24  ;;  %v406_v46 = vadd.f32 %v405_v44, %v3979_v41  ;;  %5580 = vst [vmem:[#allocation5_spill] sm:$0xff] %v4056_v22  ;;  %v4080_v44 = vld [vmem:[%s3908_s30 + $0x138] sm:$0xff] }
  0x2d   : > { %3496 = vmatprep.subr.bf16.mxu1 %v3779_v30  ;;  %5586 = vst [vmem:[#allocation11_spill] sm:$0xff] %v4080_v44 }
  0x2e   : > { %v407_v48 = vadd.f32 %v406_v46, %v3983_v43 }
  0x2f   : > { %3465 = vmatpush3.bf16.msra.mxu0 %v3778_v28  ;;  %v4064_v28 = vld [vmem:[%s3908_s30 + $0x118] sm:$0xff] }
  0x30   : > { %3497 = vmatpush3.bf16.msra.mxu1 %v3779_v30  ;;  %v408_v50 = vadd.f32 %v407_v48, %v3987_v45  ;;  %5582 = vst [vmem:[#allocation7_spill] sm:$0xff] %v4064_v28  ;;  %v4084_v48 = vld [vmem:[%s3908_s30 + $0x140] sm:$0xff] }
  0x31   : > { %5587 = vst [vmem:[#allocation12_spill] sm:$0xff] %v4084_v48 }
  0x32   : > { %v409_v52 = vadd.f32 %v408_v50, %v3991_v47 }
  0x34   : > { %v410_v54 = vadd.f32 %v409_v52, %v3995_v49  ;;  %v4088_v52 = vld [vmem:[%s3908_s30 + $0x148] sm:$0xff] }
  0x35   : > { %5588 = vst [vmem:[#allocation13_spill] sm:$0xff] %v4088_v52 }
  0x36   : > { %v411_v56 = vadd.f32 %v410_v54, %v3999_v51 }
  0x38   : > { %v412_v58 = vadd.f32 %v411_v56, %v4003_v53  ;;  %v4092_v56 = vld [vmem:[%s3908_s30 + $0x150] sm:$0xff] }
  0x39   : > { %5589 = vst [vmem:[#allocation14_spill] sm:$0xff] %v4092_v56 }
  0x3a   : > { %v413_v60 = vadd.f32 %v412_v58, %v4007_v55 }
  0x3c   : > { %v414_v62 = vadd.f32 %v413_v60, %v4011_v57  ;;  %v4096_v60 = vld [vmem:[%s3908_s30 + $0x158] sm:$0xff] }
  0x3d   : > { %5590 = vst [vmem:[#allocation15_spill] sm:$0xff] %v4096_v60 }
  0x3e   : > { %v415_v0 = vadd.f32 %v414_v62, %v4015_v59 }
  0x40   : > { %v416_v2 = vadd.f32 %v415_v0, %v4019_v61  ;;  %v4100_v0 = vld [vmem:[%s3908_s30 + $0x160] sm:$0xff] }
  0x41   : > { %5591 = vst [vmem:[#allocation16_spill] sm:$0xff] %v4100_v0 }
  0x42   : > { %v417_v4 = vadd.f32 %v416_v2, %v4023_v63 }
  0x44   : > { %v418_v8 = vadd.f32 %v417_v4, %v4027_v1  ;;  %v374_v4 = vld [vmem:[%s3908_s30 + $0x168] sm:$0xff] }
  0x46   : > { %v419_v10 = vadd.f32 %v418_v8, %v4031_v3 }
  0x48   : > { %v420_v13 = vadd.f32 %v419_v10, %v4035_v6  ;;  %v375_v10 = vld [vmem:[%s3908_s30 + $0x170] sm:$0xff] }
  0x4a   : > { %v421_v15 = vadd.f32 %v420_v13, %v4039_v9 }
  0x4c   : > { %v422_v19 = vadd.f32 %v421_v15, %v4043_v12  ;;  %v376_v15 = vld [vmem:[%s3908_s30 + $0x178] sm:$0xff] }
  0x4e   : > { %v423_v21 = vadd.f32 %v422_v19, %v4047_v14 }
  0x50   : > { %v424_v24 = vadd.f32 %v423_v21, %v4051_v18  ;;  %v377_v21 = vld [vmem:[%s3908_s30 + $0x180] sm:$0xff] }
  0x52   : > { %v425_v27 = vadd.f32 %v424_v24, %v4056_v22 }
  0x54   : > { %v426_v30 = vadd.f32 %v425_v27, %v4060_v25  ;;  %v378_v27 = vld [vmem:[%s3908_s30 + $0x188] sm:$0xff] }
  0x56   : > { %v427_v33 = vadd.f32 %v426_v30, %v4064_v28  ;;  %v392_v28 = vld [vmem:[%s3908_s30 + $0x1f8] sm:$0xff] }
  0x58   : > { %v428_v37 = vadd.f32 %v427_v33, %v4068_v31  ;;  %v379_v33 = vld [vmem:[%s3908_s30 + $0x190] sm:$0xff] }
  0x59   : > { %v391_v31 = vld [vmem:[%s3908_s30 + $0x1f0] sm:$0xff] }
  0x5a   : > { %v429_v42 = vadd.f32 %v428_v37, %v4072_v35 }
  0x5c   : > { %v430_v46 = vadd.f32 %v429_v42, %v4076_v39  ;;  %v380_v42 = vld [vmem:[%s3908_s30 + $0x198] sm:$0xff] }
  0x5e   : > { %v431_v50 = vadd.f32 %v430_v46, %v4080_v44  ;;  %v389_v44 = vld [vmem:[%s3908_s30 + $0x1e0] sm:$0xff] }
  0x60   : > { %v432_v54 = vadd.f32 %v431_v50, %v4084_v48  ;;  %v381_v50 = vld [vmem:[%s3908_s30 + $0x1a0] sm:$0xff]  ;;  %v388_v48 = vld [vmem:[%s3908_s30 + $0x1d8] sm:$0xff] }
  0x62   : > { %v433_v58 = vadd.f32 %v432_v54, %v4088_v52 }
  0x64   : > { %v434_v62 = vadd.f32 %v433_v58, %v4092_v56  ;;  %v382_v58 = vld [vmem:[%s3908_s30 + $0x1a8] sm:$0xff] }
  0x66   : > { %v435_v2 = vadd.f32 %v434_v62, %v4096_v60  ;;  %v386_v60 = vld [vmem:[%s3908_s30 + $0x1c8] sm:$0xff] }
  0x68   : > { %v436_v8 = vadd.f32 %v435_v2, %v4100_v0  ;;  %v383_v2 = vld [vmem:[%s3908_s30 + $0x1b0] sm:$0xff]  ;;  %v385_v0 = vld [vmem:[%s3908_s30 + $0x1c0] sm:$0xff] }
  0x6a   : > { %v437_v13 = vadd.f32 %v436_v8, %v374_v4 }
  0x6c   : > { %v438_v19 = vadd.f32 %v437_v13, %v375_v10  ;;  %v384_v13 = vld [vmem:[%s3908_s30 + $0x1b8] sm:$0xff] }
  0x6e   : > { %v439_v24 = vadd.f32 %v438_v19, %v376_v15 }
  0x70   : > { %v440_v30 = vadd.f32 %v439_v24, %v377_v21 }
  0x72   : > { %v441_v37 = vadd.f32 %v440_v30, %v378_v27  ;;  %v387_v30 = vld [vmem:[%s3908_s30 + $0x1d0] sm:$0xff] }
  0x74   : > { %v442_v46 = vadd.f32 %v441_v37, %v379_v33 }
  0x76   : > { %v443_v54 = vadd.f32 %v442_v46, %v380_v42  ;;  %v390_v46 = vld [vmem:[%s3908_s30 + $0x1e8] sm:$0xff] }
  0x78   : > { %v444_v62 = vadd.f32 %v443_v54, %v381_v50 }
  0x7a   : > { %v445_v8 = vadd.f32 %v444_v62, %v382_v58 }
  0x7c   : > { %v446_v19 = vadd.f32 %v445_v8, %v383_v2 }
  0x7e   : > { %v447_v24 = vadd.f32 %v446_v19, %v384_v13 }
  0x80   : > { %v448_v56 = vadd.f32 %v447_v24, %v385_v0 }
  0x82   : > { %v449_v52 = vadd.f32 %v448_v56, %v386_v60 }
  0x84   : > { %v450_v37 = vadd.f32 %v449_v52, %v387_v30 }
  0x86   : > { %v451_v39 = vadd.f32 %v450_v37, %v388_v48 }
  0x88   : > { %v452_v35 = vadd.f32 %v451_v39, %v389_v44 }
  0x8a   : > { %v453_v54 = vadd.f32 %v452_v35, %v390_v46 }
  0x8c   : > { %v454_v25 = vadd.f32 %v453_v54, %v391_v31 }
  0x8e   : > { %v455_v62 = vadd.f32 %v454_v25, %v392_v28 }
  0x90   : > { %v456_v22 = vrot.slane %v455_v62, 4 }
  0x92   : > { %v457_v18 = vadd.f32 %v456_v22, %v455_v62 }
  0x94   : > { %v458_v8 = vrot.slane %v457_v18, 2 }
  0x96   : > { %v459_v14 = vadd.f32 %v458_v8, %v457_v18 }
  0x98   : > { %v460_v19 = vrot.slane %v459_v14, 1 }
  0x9a   : > { %v461_v12 = vadd.f32 %v460_v19, %v459_v14 }
  0x9c   : > { %v4123_v24 = vmul.f32 0.001953125, %v461_v12 }
  0x9e   : > { %v4126_v56 = vsub.f32 %v374_v4, %v4123_v24  ;;  %v4129_v52 = vsub.f32 %v375_v10, %v4123_v24  ;;  %v4132_v39 = vsub.f32 %v376_v15, %v4123_v24  ;;  %v4135_v35 = vsub.f32 %v377_v21, %v4123_v24 }
  0x9f   : > { %v4138_v22 = vsub.f32 %v378_v27, %v4123_v24  ;;  %v4141_v18 = vsub.f32 %v379_v33, %v4123_v24  ;;  %v4144_v12 = vsub.f32 %v380_v42, %v4123_v24  ;;  %v4147_v14 = vsub.f32 %v381_v50, %v4123_v24 }
  0xa0   : > { %5592 = vst [vmem:[#allocation17_spill] sm:$0xff] %v4132_v39  ;;  %v4150_v25 = vsub.f32 %v382_v58, %v4123_v24  ;;  %v4153_v4 = vsub.f32 %v383_v2, %v4123_v24  ;;  %v4156_v10 = vsub.f32 %v384_v13, %v4123_v24  ;;  %v4159_v15 = vsub.f32 %v385_v0, %v4123_v24 }
  0xa1   : > { %v4162_v21 = vsub.f32 %v386_v60, %v4123_v24  ;;  %v4165_v27 = vsub.f32 %v387_v30, %v4123_v24  ;;  %v4168_v33 = vsub.f32 %v388_v48, %v4123_v24  ;;  %v4171_v42 = vsub.f32 %v389_v44, %v4123_v24 }
  0xa2   : > { %5593 = vst [vmem:[#allocation18_spill] sm:$0xff] %v4156_v10  ;;  %v4174_v50 = vsub.f32 %v390_v46, %v4123_v24  ;;  %v4177_v58 = vsub.f32 %v391_v31, %v4123_v24  ;;  %v4180_v0 = vsub.f32 %v392_v28, %v4123_v24  ;;  %v4184_v60 = vsub.f32 %v3914_v5, %v4123_v24 }
  0xa3   : > { %v4188_v48 = vsub.f32 %v3918_v7, %v4123_v24  ;;  %v4192_v44 = vsub.f32 %v3925_v11, %v4123_v24  ;;  %v4196_v2 = vsub.f32 %v3932_v16, %v4123_v24  ;;  %v4204_v5 = vsub.f32 %v3935_v17, %v4123_v24 }
  0xa4   : > { %5594 = vst [vmem:[#allocation19_spill] sm:$0xff] %v4180_v0  ;;  %5595 = vst [vmem:[#allocation20_spill] sm:$0xff] %v4184_v60  ;;  %v528_v28 = vmul.f32 %v4184_v60, %v4184_v60  ;;  %v4210_v11 = vsub.f32 %v3940_v20, %v4123_v24  ;;  %v4216_v30 = vsub.f32 %v3945_v23, %v4123_v24 }
  0xa5   : > { %5596 = vst [vmem:[#allocation21_spill] sm:$0xff] %v4188_v48  ;;  %5597 = vst [vmem:[#allocation22_spill] sm:$0xff] %v4192_v44  ;;  %v529_v31 = vmul.f32 %v4188_v48, %v4188_v48  ;;  %v530_v7 = vmul.f32 %v4192_v44, %v4192_v44  ;;  %v531_v16 = vmul.f32 %v4196_v2, %v4196_v2 }
  0xa6   : > { %5598 = vst [vmem:[#allocation23_spill] sm:$0xff] %v4196_v2  ;;  %5599 = vst [vmem:[#allocation24_spill] sm:$0xff] %v4204_v5  ;;  %v532_v37 = vmul.f32 %v4204_v5, %v4204_v5  ;;  %v4222_v46 = vsub.f32 %v3950_v26, %v4123_v24  ;;  %v533_v20 = vmul.f32 %v4210_v11, %v4210_v11 }
  0xa7   : > { %5600 = vst [vmem:[#allocation25_spill] sm:$0xff] %v4210_v11  ;;  %v592_v13 = vadd.f32 %v529_v31, %v528_v28  ;;  %5601 = vst [vmem:[#allocation26_spill] sm:$0xff] %v4216_v30  ;;  %v4228_v62 = vsub.f32 %v3955_v29, %v4123_v24  ;;  %v534_v23 = vmul.f32 %v4216_v30, %v4216_v30 }
  0xa8   : > { %5602 = vst [vmem:[#allocation27_spill] sm:$0xff] %v4222_v46  ;;  %v4234_v19 = vsub.f32 %v3960_v32, %v4123_v24  ;;  %v535_v26 = vmul.f32 %v4222_v46, %v4222_v46  ;;  %v4240_v31 = vsub.f32 %v3964_v34, %v4123_v24  ;;  %v573_v44 = vmul.f32 %v4126_v56, %v4126_v56 }
  0xa9   : > { %v593_v17 = vadd.f32 %v592_v13, %v530_v7  ;;  %v536_v29 = vmul.f32 %v4228_v62, %v4228_v62 }
  0xaa   : > { %v537_v32 = vmul.f32 %v4234_v19, %v4234_v19  ;;  %v538_v34 = vmul.f32 %v4240_v31, %v4240_v31 }
  0xab   : > { %v594_v54 = vadd.f32 %v593_v17, %v531_v16  ;;  %v4246_v16 = vsub.f32 %v3968_v36, %v4123_v24 }
  0xad   : > { %v595_v8 = vadd.f32 %v594_v54, %v532_v37  ;;  %v4252_v37 = vsub.f32 %v3972_v38, %v4123_v24  ;;  %v539_v36 = vmul.f32 %v4246_v16, %v4246_v16 }
  0xaf   : > { %v596_v28 = vadd.f32 %v595_v8, %v533_v20  ;;  %v4258_v20 = vsub.f32 %v3976_v40, %v4123_v24  ;;  %v540_v38 = vmul.f32 %v4252_v37, %v4252_v37 }
  0xb1   : > { %v597_v7 = vadd.f32 %v596_v28, %v534_v23  ;;  %v4264_v23 = vsub.f32 %v3979_v41, %v4123_v24  ;;  %v541_v40 = vmul.f32 %v4258_v20, %v4258_v20 }
  0xb3   : > { %v598_v13 = vadd.f32 %v597_v7, %v535_v26  ;;  %v4270_v26 = vsub.f32 %v3983_v43, %v4123_v24  ;;  %v542_v41 = vmul.f32 %v4264_v23, %v4264_v23 }
  0xb5   : > { %v599_v17 = vadd.f32 %v598_v13, %v536_v29  ;;  %v4276_v29 = vsub.f32 %v3987_v45, %v4123_v24  ;;  %v543_v43 = vmul.f32 %v4270_v26, %v4270_v26 }
  0xb7   : > { %v600_v54 = vadd.f32 %v599_v17, %v537_v32  ;;  %v4282_v32 = vsub.f32 %v3991_v47, %v4123_v24  ;;  %v544_v45 = vmul.f32 %v4276_v29, %v4276_v29 }
  0xb9   : > { %v601_v8 = vadd.f32 %v600_v54, %v538_v34  ;;  %v4288_v34 = vsub.f32 %v3995_v49, %v4123_v24  ;;  %v545_v47 = vmul.f32 %v4282_v32, %v4282_v32 }
  0xbb   : > { %v602_v28 = vadd.f32 %v601_v8, %v539_v36  ;;  %v4294_v36 = vsub.f32 %v3999_v51, %v4123_v24  ;;  %v546_v49 = vmul.f32 %v4288_v34, %v4288_v34 }
  0xbd   : > { %v603_v7 = vadd.f32 %v602_v28, %v540_v38  ;;  %v4300_v38 = vsub.f32 %v4003_v53, %v4123_v24  ;;  %v547_v51 = vmul.f32 %v4294_v36, %v4294_v36 }
  0xbf   : > { %v604_v13 = vadd.f32 %v603_v7, %v541_v40  ;;  %v4306_v40 = vsub.f32 %v4007_v55, %v4123_v24  ;;  %v548_v53 = vmul.f32 %v4300_v38, %v4300_v38 }
  0xc1   : > { %v605_v17 = vadd.f32 %v604_v13, %v542_v41  ;;  %v4312_v41 = vsub.f32 %v4011_v57, %v4123_v24  ;;  %v549_v55 = vmul.f32 %v4306_v40, %v4306_v40 }
  0xc3   : > { %v606_v54 = vadd.f32 %v605_v17, %v543_v43  ;;  %v4318_v43 = vsub.f32 %v4015_v59, %v4123_v24  ;;  %v4327_v17 = vsub.f32 %v4019_v61, %v4123_v24  ;;  %v550_v57 = vmul.f32 %v4312_v41, %v4312_v41 }
  0xc4   : > { %v4334_v59 = vsub.f32 %v4023_v63, %v4123_v24  ;;  %v4343_v61 = vsub.f32 %v4027_v1, %v4123_v24  ;;  %v4350_v63 = vsub.f32 %v4031_v3, %v4123_v24 }
  0xc5   : > { %v607_v8 = vadd.f32 %v606_v54, %v544_v45  ;;  %5603 = vst [vmem:[#allocation28_spill] sm:$0xff] %v4318_v43  ;;  %v4323_v45 = vld [vmem:[%s3901_s27 + $0xb8] sm:$0xff]   ;;  %v551_v54 = vmul.f32 %v4318_v43, %v4318_v43 }
  0xc6   : > { %3514 = vmatprep.subr.bf16.mxu0 %v4323_v45  ;;  %v554_v1 = vmul.f32 %v4343_v61, %v4343_v61  ;;  %v555_v3 = vmul.f32 %v4350_v63, %v4350_v63 }
  0xc7   : > { %v608_v28 = vadd.f32 %v607_v8, %v545_v47  ;;  %v4339_v8 = vld [vmem:[%s3901_s27 + $0xf8] sm:$0xff]  }
  0xc8   : > { %3546 = vmatprep.subr.bf16.mxu1 %v4339_v8 }
  0xc9   : > { %v609_v7 = vadd.f32 %v608_v28, %v546_v49 }
  0xcb   : > { %v610_v13 = vadd.f32 %v609_v7, %v547_v51  ;;  %v552_v51 = vmul.f32 %v4327_v17, %v4327_v17 }
  0xcd   : > { %v611_v47 = vadd.f32 %v610_v13, %v548_v53  ;;  %v553_v53 = vmul.f32 %v4334_v59, %v4334_v59 }
  0xcf   : > { %v612_v49 = vadd.f32 %v611_v47, %v549_v55  ;;  %v4356_v55 = vsub.f32 %v4035_v6, %v4123_v24 }
  0xd1   : > { %v613_v28 = vadd.f32 %v612_v49, %v550_v57  ;;  %v4362_v57 = vsub.f32 %v4039_v9, %v4123_v24  ;;  %v5604_v49 = vld [vmem:[#allocation2_spill] sm:$0xff]  ;;  %v556_v6 = vmul.f32 %v4356_v55, %v4356_v55 }
  0xd2   : > { %v4368_v43 = vsub.f32 %v5604_v49, %v4123_v24  ;;  %v5609_v49 = vld [vmem:[#allocation5_spill] sm:$0xff] }
  0xd3   : > { %v614_v7 = vadd.f32 %v613_v28, %v551_v54  ;;  %v5605_v28 = vld [vmem:[#allocation3_spill] sm:$0xff]  ;;  %v557_v9 = vmul.f32 %v4362_v57, %v4362_v57  ;;  %v4386_v11 = vsub.f32 %v5609_v49, %v4123_v24  ;;  %v5615_v49 = vld [vmem:[#allocation8_spill] sm:$0xff] }
  0xd4   : > { %v4374_v46 = vsub.f32 %v5605_v28, %v4123_v24  ;;  %v5611_v28 = vld [vmem:[#allocation6_spill] sm:$0xff] }
  0xd5   : > { %v615_v13 = vadd.f32 %v614_v7, %v552_v51  ;;  %v5607_v7 = vld [vmem:[#allocation4_spill] sm:$0xff]  ;;  %v4392_v5 = vsub.f32 %v5611_v28, %v4123_v24  ;;  %v5617_v28 = vld [vmem:[#allocation9_spill] sm:$0xff] }
  0xd6   : > { %5606 = vst [vmem:[#allocation2_spill] sm:$0xff] %v4374_v46  ;;  %v4380_v30 = vsub.f32 %v5607_v7, %v4123_v24  ;;  %5610 = vst [vmem:[#allocation4_spill] sm:$0xff] %v4386_v11  ;;  %v5613_v7 = vld [vmem:[#allocation7_spill] sm:$0xff] }
  0xd7   : > { %v616_v47 = vadd.f32 %v615_v13, %v553_v53  ;;  %v558_v53 = vmul.f32 %v4368_v43, %v4368_v43  ;;  %5612 = vst [vmem:[#allocation5_spill] sm:$0xff] %v4392_v5  ;;  %v4398_v2 = vsub.f32 %v5613_v7, %v4123_v24  ;;  %v5619_v7 = vld [vmem:[#allocation10_spill] sm:$0xff] }
  0xd8   : > { %5608 = vst [vmem:[#allocation3_spill] sm:$0xff] %v4380_v30 }
  0xd9   : > { %v617_v54 = vadd.f32 %v616_v47, %v554_v1  ;;  %v559_v1 = vmul.f32 %v4374_v46, %v4374_v46  ;;  %5614 = vst [vmem:[#allocation6_spill] sm:$0xff] %v4398_v2  ;;  %v4404_v46 = vsub.f32 %v5615_v49, %v4123_v24  ;;  %v5621_v49 = vld [vmem:[#allocation11_spill] sm:$0xff] }
  0xdb   : > { %v618_v51 = vadd.f32 %v617_v54, %v555_v3  ;;  %v560_v3 = vmul.f32 %v4380_v30, %v4380_v30  ;;  %5616 = vst [vmem:[#allocation7_spill] sm:$0xff] %v4404_v46  ;;  %v4410_v30 = vsub.f32 %v5617_v28, %v4123_v24  ;;  %v5623_v28 = vld [vmem:[#allocation12_spill] sm:$0xff] }
  0xdd   : > { %v619_v13 = vadd.f32 %v618_v51, %v556_v6  ;;  %v561_v6 = vmul.f32 %v4386_v11, %v4386_v11  ;;  %5618 = vst [vmem:[#allocation8_spill] sm:$0xff] %v4410_v30  ;;  %v4416_v11 = vsub.f32 %v5619_v7, %v4123_v24  ;;  %v5624_v7 = vld [vmem:[#allocation13_spill] sm:$0xff] }
  0xdf   : > { %v620_v47 = vadd.f32 %v619_v13, %v557_v9  ;;  %v562_v9 = vmul.f32 %v4392_v5, %v4392_v5  ;;  %5620 = vst [vmem:[#allocation9_spill] sm:$0xff] %v4416_v11  ;;  %v4422_v5 = vsub.f32 %v5621_v49, %v4123_v24  ;;  %v5625_v49 = vld [vmem:[#allocation14_spill] sm:$0xff] }
  0xe1   : > { %v621_v54 = vadd.f32 %v620_v47, %v558_v53  ;;  %v563_v53 = vmul.f32 %v4398_v2, %v4398_v2  ;;  %5622 = vst [vmem:[#allocation10_spill] sm:$0xff] %v4422_v5  ;;  %v4428_v2 = vsub.f32 %v5623_v28, %v4123_v24  ;;  %v5626_v28 = vld [vmem:[#allocation15_spill] sm:$0xff] }
  0xe3   : > { %v622_v51 = vadd.f32 %v621_v54, %v559_v1  ;;  %v564_v1 = vmul.f32 %v4404_v46, %v4404_v46  ;;  %v4434_v46 = vsub.f32 %v5624_v7, %v4123_v24  ;;  %v5627_v7 = vld [vmem:[#allocation16_spill] sm:$0xff] }
  0xe5   : > { %v623_v13 = vadd.f32 %v622_v51, %v560_v3  ;;  %v565_v3 = vmul.f32 %v4410_v30, %v4410_v30  ;;  %v4440_v30 = vsub.f32 %v5625_v49, %v4123_v24 }
  0xe7   : > { %v624_v47 = vadd.f32 %v623_v13, %v561_v6  ;;  %v566_v6 = vmul.f32 %v4416_v11, %v4416_v11  ;;  %v4446_v11 = vsub.f32 %v5626_v28, %v4123_v24 }
  0xe9   : > { %v625_v54 = vadd.f32 %v624_v47, %v562_v9  ;;  %v567_v9 = vmul.f32 %v4422_v5, %v4422_v5  ;;  %v4452_v5 = vsub.f32 %v5627_v7, %v4123_v24  ;;  %v571_v49 = vmul.f32 %v4446_v11, %v4446_v11 }
  0xea   : > { %v574_v24 = vmul.f32 %v4129_v52, %v4129_v52  ;;  %v575_v7 = vmul.f32 %v4132_v39, %v4132_v39 }
  0xeb   : > { %v626_v51 = vadd.f32 %v625_v54, %v563_v53  ;;  %v568_v53 = vmul.f32 %v4428_v2, %v4428_v2 }
  0xed   : > { %v627_v13 = vadd.f32 %v626_v51, %v564_v1  ;;  %v569_v1 = vmul.f32 %v4434_v46, %v4434_v46 }
  0xef   : > { %v628_v47 = vadd.f32 %v627_v13, %v565_v3  ;;  %v570_v3 = vmul.f32 %v4440_v30, %v4440_v30 }
  0xf1   : > { %v629_v54 = vadd.f32 %v628_v47, %v566_v6  ;;  %v572_v47 = vmul.f32 %v4452_v5, %v4452_v5 }
  0xf3   : > { %v630_v51 = vadd.f32 %v629_v54, %v567_v9 }
  0xf5   : > { %v631_v13 = vadd.f32 %v630_v51, %v568_v53  ;;  %v576_v51 = vmul.f32 %v4135_v35, %v4135_v35 }
  0xf7   : > { %v632_v6 = vadd.f32 %v631_v13, %v569_v1  ;;  %v577_v13 = vmul.f32 %v4138_v22, %v4138_v22 }
  0xf9   : > { %v633_v28 = vadd.f32 %v632_v6, %v570_v3  ;;  %v578_v6 = vmul.f32 %v4141_v18, %v4141_v18 }
  0xfb   : > { %v634_v9 = vadd.f32 %v633_v28, %v571_v49  ;;  %v579_v28 = vmul.f32 %v4144_v12, %v4144_v12 }
  0xfd   : > { %v635_v54 = vadd.f32 %v634_v9, %v572_v47  ;;  %v580_v9 = vmul.f32 %v4147_v14, %v4147_v14 }
  0xff   : > { %v636_v53 = vadd.f32 %v635_v54, %v573_v44  ;;  %v581_v54 = vmul.f32 %v4150_v25, %v4150_v25 }
 0x101   : > { %v637_v1 = vadd.f32 %v636_v53, %v574_v24  ;;  %v582_v53 = vmul.f32 %v4153_v4, %v4153_v4 }
 0x103   : > { %v638_v3 = vadd.f32 %v637_v1, %v575_v7  ;;  %v583_v1 = vmul.f32 %v4156_v10, %v4156_v10 }
 0x105   : > { %v639_v49 = vadd.f32 %v638_v3, %v576_v51  ;;  %v584_v3 = vmul.f32 %v4159_v15, %v4159_v15 }
 0x107   : > { %v640_v47 = vadd.f32 %v639_v49, %v577_v13  ;;  %v585_v49 = vmul.f32 %v4162_v21, %v4162_v21 }
 0x109   : > { %v641_v44 = vadd.f32 %v640_v47, %v578_v6  ;;  %v586_v47 = vmul.f32 %v4165_v27, %v4165_v27 }
 0x10b   : > { %v642_v24 = vadd.f32 %v641_v44, %v579_v28  ;;  %v587_v44 = vmul.f32 %v4168_v33, %v4168_v33 }
 0x10d   : > { %v643_v7 = vadd.f32 %v642_v24, %v580_v9  ;;  %v588_v24 = vmul.f32 %v4171_v42, %v4171_v42 }
 0x10f   : > { %v644_v51 = vadd.f32 %v643_v7, %v581_v54  ;;  %v589_v7 = vmul.f32 %v4174_v50, %v4174_v50 }
 0x111   : > { %v645_v13 = vadd.f32 %v644_v51, %v582_v53 }
 0x113   : > { %v646_v6 = vadd.f32 %v645_v13, %v583_v1  ;;  %v590_v1 = vmul.f32 %v4177_v58, %v4177_v58 }
 0x115   : > { %v647_v28 = vadd.f32 %v646_v6, %v584_v3  ;;  %v591_v3 = vmul.f32 %v4180_v0, %v4180_v0 }
 0x117   : > { %v648_v9 = vadd.f32 %v647_v28, %v585_v49 }
 0x119   : > { %v649_v54 = vadd.f32 %v648_v9, %v586_v47 }
 0x11b   : > { %v650_v53 = vadd.f32 %v649_v54, %v587_v44 }
 0x11d   : > { %v651_v51 = vadd.f32 %v650_v53, %v588_v24 }
 0x11f   : > { %v652_v13 = vadd.f32 %v651_v51, %v589_v7 }
 0x121   : > { %v653_v6 = vadd.f32 %v652_v13, %v590_v1  ;;  %v4527_v1 = vld [vmem:[%s4508_s12] ss:$0 sm:$0xff] }
 0x123   : > { %v654_v49 = vadd.f32 %v653_v6, %v591_v3 }
 0x125   : > { %v655_v28 = vrot.slane %v654_v49, 4 }
 0x127   : > { %v656_v10 = vadd.f32 %v655_v28, %v654_v49 }
 0x129   : > { %v657_v48 = vrot.slane %v656_v10, 2 }
 0x12b   : > { %v658_v47 = vadd.f32 %v657_v48, %v656_v10  ;;  %v4513_v10 = vld [vmem:[%s4502_s9] ss:$0 sm:$0xff]  ;;  %v5531_v48 = vmov 0.0  }
 0x12d   : > { %v659_v9 = vrot.slane %v658_v47, 1 }
 0x12f   : > { %v660_v60 = vadd.f32 %v659_v9, %v658_v47 }
 0x131   : > { %v661_v39 = vmul.f32 0.001953125, %v660_v60 }
 0x133   : > { %v662_v44 = vadd.f32 1e-05, %v661_v39  ;;  %v949_v39 = vrot.slane %v5531_v48, 7 }
 0x135   : > { %3836 = vrsqrt.f32 %v662_v44 }
 0x142   : > { %v4510_v24 = vpop.eup %3836 }
 0x143   : > { %v4518_v60 = vmul.f32 %v4510_v24, %v4246_v16  ;;  %v680_v54 = vmul.f32 %v4510_v24, %v4276_v29  ;;  %v681_v7 = vmul.f32 %v4510_v24, %v4282_v32  ;;  %v682_v53 = vmul.f32 %v4510_v24, %v4288_v34 }
 0x144   : > { %v688_v51 = vmul.f32 %v4510_v24, %v4327_v17  ;;  %v689_v3 = vmul.f32 %v4510_v24, %v4334_v59  ;;  %v720_v16 = vmul.f32 %v4510_v24, %v4159_v15  ;;  %v690_v29 = vmul.f32 %v4510_v24, %v4343_v61 }
 0x145   : > { %v751_v13 = vmul.f32 %v4513_v10, %v680_v54  ;;  %v752_v32 = vmul.f32 %v4513_v10, %v681_v7  ;;  %v753_v34 = vmul.f32 %v4513_v10, %v682_v53  ;;  %v683_v6 = vmul.f32 %v4510_v24, %v4294_v36 }
 0x146   : > { %v759_v17 = vmul.f32 %v4513_v10, %v688_v51  ;;  %v760_v49 = vmul.f32 %v4513_v10, %v689_v3  ;;  %v791_v59 = vmul.f32 %v4513_v10, %v720_v16  ;;  %v761_v15 = vmul.f32 %v4513_v10, %v690_v29 }
 0x147   : > { %v4547_v28 = vadd.f32 %v4527_v1, %v751_v13  ;;  %v4550_v61 = vadd.f32 %v4527_v1, %v752_v32  ;;  %v824_v47 = vadd.f32 %v4527_v1, %v753_v34  ;;  %v684_v9 = vmul.f32 %v4510_v24, %v4300_v38 }
 0x148   : > { %v830_v36 = vadd.f32 %v4527_v1, %v759_v17  ;;  %v831_v44 = vadd.f32 %v4527_v1, %v760_v49  ;;  %v862_v54 = vadd.f32 %v4527_v1, %v791_v59  ;;  %v832_v7 = vadd.f32 %v4527_v1, %v761_v15 }
 0x149   : > { %v5530_v53 = vmax.f32 %v4547_v28, 0.0  ;;  %v5529_v51 = vmax.f32 %v4550_v61, 0.0  ;;  %v888_v3 = vmax.f32 %v824_v47, 0.0  ;;  %v754_v16 = vmul.f32 %v4513_v10, %v683_v6 }
 0x14a   : > { %v4562_v29 = vmax.f32 %v830_v36, 0.0  ;;  %v4564_v13 = vmax.f32 %v831_v44, 0.0  ;;  %v4566_v38 = vmax.f32 %v862_v54, 0.0  ;;  %v4569_v32 = vmax.f32 %v832_v7, 0.0  ;;  %v3782_v44 = vld [vmem:[%s3901_s27 + $0xb0] sm:$0xff]  }
 0x14b   : > { %v1019_v34 = vpack.c.bf16 %v5530_v53, %v5531_v48  ;;  %v1020_v17 = vpack.c.bf16 %v888_v3, %v5529_v51  ;;  %v755_v49 = vmul.f32 %v4513_v10, %v684_v9  ;;  %v825_v6 = vadd.f32 %v4527_v1, %v754_v16 }
 0x14c   : > { %5628 = vst [vmem:[#allocation11_spill] sm:$0xff] %v4562_v29  ;;  %5629 = vst [vmem:[#allocation12_spill] sm:$0xff] %v4564_v13  ;;  %v950_v59 = vrot.slane %v4562_v29, 7  ;;  %v951_v15 = vrot.slane %v4564_v13, 7  ;;  %v5534_v47 = vrot.slane %v4566_v38, 7  ;;  %v952_v36 = vrot.slane %v4569_v32, 7 }
 0x14d   : > { %5630 = vst [vmem:[#allocation13_spill] sm:$0xff] %v4566_v38  ;;  %5631 = vst [vmem:[#allocation14_spill] sm:$0xff] %v4569_v32  ;;  %3466 = vmatprep.mubr.bf16.mxu0 %v1019_v34  ;;  %v4588_v7 = vadd.f32 %v4527_v1, %v755_v49  ;;  %v889_v9 = vmax.f32 %v825_v6, 0.0  ;;  %v685_v16 = vmul.f32 %v4510_v24, %v4306_v40  ;;  %v3783_v6 = vld [vmem:[%s3901_s27 + $0xf0] sm:$0xff]  }
 0x14e   : > { %v686_v51 = vmul.f32 %v4510_v24, %v4312_v41  ;;  %3467 = vmatmul.mubr.bf16.vlgmr.msra.gmra.mxu0 %v1020_v17  ;;  %v3015_v53 = vpack.c.bf16 %v950_v59, %v949_v39  ;;  %v4596_v34 = vpack.c.bf16 %v5534_v47, %v949_v39  ;;  %v4598_v48 = vpack.c.bf16 %v951_v15, %v950_v59  ;;  %v3784_v39 = vld [vmem:[%s3901_s27 + $0xa8] sm:$0xff]  }
 0x14f   : > { %5634 = vst [vmem:[#allocation15_spill] sm:$0xff] %v4588_v7  ;;  %v3020_v49 = vpack.c.bf16 %v952_v36, %v951_v15  ;;  %3515 = vmatpush3.bf16.msra.mxu0 %v4323_v45  ;;  %v5535_v0 = vmax.f32 %v4588_v7, 0.0  ;;  %v4605_v40 = vpack.c.bf16 %v889_v9, %v888_v3  ;;  %v756_v41 = vmul.f32 %v4513_v10, %v685_v16  ;;  %v3810_v7 = vld [vmem:[%s3901_s27 + $0x100] sm:$0xff]  }
 0x150   : > { %v757_v17 = vmul.f32 %v4513_v10, %v686_v51  ;;  %3498 = vmatprep.mubr.msk.bf16.mxu1 %vm4583_vm2, %v3015_v53  ;;  %3516 = vmatprep.subr.bf16.mxu0 %v3782_v44  ;;  %v691_v59 = vmul.f32 %v4510_v24, %v4350_v63  ;;  %v692_v45 = vmul.f32 %v4510_v24, %v4356_v55 }
 0x151   : > { %5635 = vst [vmem:[#allocation16_spill] sm:$0xff] %v4605_v40  ;;  %v693_v15 = vmul.f32 %v4510_v24, %v4362_v57  ;;  %3499 = vmatmul.mubr.msk.bf16.vlgmr.msra.gmra.mxu1 %vm4583_vm2, %v3020_v49  ;;  %v1021_v51 = vpack.c.bf16 %v5535_v0, %v889_v9  ;;  %v4623_v53 = vadd.f32 %v4527_v1, %v756_v41 }
 0x152   : > { %v4626_v3 = vadd.f32 %v4527_v1, %v757_v17  ;;  %v694_v63 = vmul.f32 %v4510_v24, %v4368_v43  ;;  %3547 = vmatpush3.bf16.msra.mxu1 %v4339_v8  ;;  %v762_v55 = vmul.f32 %v4513_v10, %v691_v59  ;;  %v763_v57 = vmul.f32 %v4513_v10, %v692_v45  ;;  %v3785_v17 = vld [vmem:[%s3901_s27 + $0xe8] sm:$0xff]  }
 0x153   : > { %5636 = vst [vmem:[#allocation29_spill] sm:$0xff] %v4623_v53  ;;  %v764_v16 = vmul.f32 %v4513_v10, %v693_v15  ;;  %v712_v9 = vmul.f32 %v4510_v24, %v4135_v35  ;;  %3517 = vmatpush3.bf16.msra.mxu0 %v3782_v44  ;;  %3548 = vmatprep.subr.bf16.mxu1 %v3783_v6  ;;  %v5537_v49 = vmax.f32 %v4623_v53, 0.0  ;;  %v5656_v53 = vld [vmem:[#allocation25_spill] sm:$0xff] }
 0x154   : > { %5637 = vst [vmem:[#allocation30_spill] sm:$0xff] %v4626_v3  ;;  %v5536_v41 = vmax.f32 %v4626_v3, 0.0  ;;  %v765_v43 = vmul.f32 %v4513_v10, %v694_v63  ;;  %v713_v8 = vmul.f32 %v4510_v24, %v4138_v22  ;;  %3470 = vmatprep.mubr.bf16.mxu0 %v1021_v51  ;;  %3518 = vmatprep.subr.bf16.mxu0 %v3784_v39  ;;  %v3786_v63 = vld [vmem:[%s3901_s27 + $0xa0] sm:$0xff]  }
 0x155   : > { %v833_v59 = vadd.f32 %v4527_v1, %v762_v55  ;;  %v834_v45 = vadd.f32 %v4527_v1, %v763_v57  ;;  %v835_v35 = vadd.f32 %v4527_v1, %v764_v16  ;;  %v783_v47 = vmul.f32 %v4513_v10, %v712_v9 }
 0x156   : > { %v1022_v44 = vpack.c.bf16 %v5536_v41, %v5537_v49  ;;  %v836_v15 = vadd.f32 %v4527_v1, %v765_v43  ;;  %v714_v22 = vmul.f32 %v4510_v24, %v4141_v18  ;;  %3549 = vmatpush3.bf16.msra.mxu1 %v3783_v6  ;;  %v784_v16 = vmul.f32 %v4513_v10, %v713_v8  ;;  %v3787_v43 = vld [vmem:[%s3901_s27 + $0xe0] sm:$0xff]  }
 0x157   : > { %v4654_v51 = vmax.f32 %v833_v59, 0.0  ;;  %v4656_v55 = vmax.f32 %v834_v45, 0.0  ;;  %v4658_v57 = vmax.f32 %v835_v35, 0.0  ;;  %3550 = vmatprep.subr.bf16.mxu1 %v3785_v17  ;;  %v4665_v41 = vadd.f32 %v4527_v1, %v783_v47  ;;  %3519 = vmatpush3.bf16.msra.mxu0 %v3784_v39 }
 0x158   : > { %3471 = vmatmul.mubr.bf16.gmra.mxu0 %v1022_v44  ;;  %v4661_v0 = vmax.f32 %v836_v15, 0.0  ;;  %v785_v18 = vmul.f32 %v4513_v10, %v714_v22  ;;  %v721_v6 = vmul.f32 %v4510_v24, %v4162_v21  ;;  %v4674_v45 = vadd.f32 %v4527_v1, %v784_v16  ;;  %3520 = vmatprep.subr.bf16.mxu0 %v3786_v63  ;;  %v3788_v22 = vld [vmem:[%s3901_s27 + $0x98] sm:$0xff]  }
 0x159   : > { %5638 = vst [vmem:[#allocation31_spill] sm:$0xff] %v4654_v51  ;;  %v953_v9 = vrot.slane %v4654_v51, 7  ;;  %v5538_v59 = vrot.slane %v4656_v55, 7  ;;  %v5550_v8 = vrot.slane %v4658_v57, 7  ;;  %v5540_v47 = vmax.f32 %v4665_v41, 0.0 }
 0x15a   : > { %v5539_v35 = vrot.slane %v4661_v0, 7  ;;  %v4679_v44 = vadd.f32 %v4527_v1, %v785_v18  ;;  %v722_v21 = vmul.f32 %v4510_v24, %v4165_v27  ;;  %3551 = vmatpush3.bf16.msra.mxu1 %v3785_v17  ;;  %v792_v49 = vmul.f32 %v4513_v10, %v721_v6 }
 0x15b   : > { %v3025_v39 = vpack.c.bf16 %v5538_v59, %v953_v9  ;;  %v4687_v15 = vpack.c.bf16 %v953_v9, %v952_v36  ;;  %3552 = vmatprep.subr.bf16.mxu1 %v3787_v43  ;;  %v5639_v27 = vmov 0.0   ;;  %3521 = vmatpush3.bf16.msra.mxu0 %v3786_v63  ;;  %v3789_v9 = vld [vmem:[%s3901_s27 + $0xd8] sm:$0xff]   ;;  %v715_v16 = vmul.f32 %v4510_v24, %v4144_v12 }
 0x15c   : > { %v3030_v18 = vpack.c.bf16 %v5539_v35, %v5550_v8  ;;  %v1023_v59 = vpack.c.bf16 %v5540_v47, %v5639_v27  ;;  %v5541_v36 = vmax.f32 %v4679_v44, 0.0  ;;  %v793_v17 = vmul.f32 %v4513_v10, %v722_v21  ;;  %3522 = vmatprep.subr.bf16.mxu0 %v3788_v22 }
 0x15d   : > { %3502 = vmatprep.mubr.msk.bf16.mxu1 %vm4583_vm2, %v3025_v39  ;;  %v863_v6 = vadd.f32 %v4527_v1, %v792_v49  ;;  %v716_v35 = vmul.f32 %v4510_v24, %v4147_v14  ;;  %v5640_v21 = vmax.f32 %v4674_v45, 0.0  ;;  %v3790_v49 = vld [vmem:[%s3901_s27 + $0x90] sm:$0xff]   ;;  %v717_v47 = vmul.f32 %v4510_v24, %v4150_v25 }
 0x15e   : > { %3503 = vmatmul.mubr.msk.bf16.gmra.mxu1 %vm4583_vm2, %v3030_v18  ;;  %3474 = vmatprep.mubr.bf16.mxu0 %v1023_v59  ;;  %v864_v63 = vadd.f32 %v4527_v1, %v793_v17  ;;  %v786_v14 = vmul.f32 %v4513_v10, %v715_v16  ;;  %v718_v59 = vmul.f32 %v4510_v24, %v4153_v4  ;;  %v3791_v25 = vld [vmem:[%s3901_s27 + $0xd0] sm:$0xff]  }
 0x15f   : > { %v1024_v39 = vpack.c.bf16 %v5541_v36, %v5640_v21  ;;  %3553 = vmatpush3.bf16.msra.mxu1 %v3787_v43  ;;  %v4719_v12 = vmax.f32 %v863_v6, 0.0  ;;  %v787_v18 = vmul.f32 %v4513_v10, %v716_v35  ;;  %3506 = vmatprep.mubr.msk.bf16.mxu1 %vm4583_vm2, %v4596_v34  ;;  %v788_v43 = vmul.f32 %v4513_v10, %v717_v47  ;;  %v3793_v36 = vld [vmem:[%s3901_s27 + $0xc8] sm:$0xff]  }
 0x160   : > { %v4728_v17 = vmax.f32 %v864_v63, 0.0  ;;  %v723_v6 = vmul.f32 %v4510_v24, %v4168_v33  ;;  %v724_v35 = vmul.f32 %v4510_v24, %v4171_v42  ;;  %3523 = vmatpush3.bf16.msra.mxu0 %v3788_v22  ;;  %3554 = vmatprep.subr.bf16.mxu1 %v3789_v9  ;;  %v4738_v16 = vadd.f32 %v4527_v1, %v786_v14  ;;  %v3792_v33 = vld [vmem:[%s3901_s27 + $0x88] sm:$0xff]  }
 0x161   : > { %5641 = vst [vmem:[#allocation32_spill] sm:$0xff] %v4719_v12  ;;  %3475 = vmatmul.mubr.bf16.gmra.mxu0 %v1024_v39  ;;  %v5542_v4 = vrot.slane %v4719_v12, 7  ;;  %v4741_v34 = vadd.f32 %v4527_v1, %v787_v18  ;;  %v789_v21 = vmul.f32 %v4513_v10, %v718_v59  ;;  %3524 = vmatprep.subr.bf16.mxu0 %v3790_v49 }
 0x162   : > { %v5543_v47 = vrot.slane %v4728_v17, 7  ;;  %v4747_v39 = vadd.f32 %v4527_v1, %v788_v43  ;;  %v794_v42 = vmul.f32 %v4513_v10, %v723_v6  ;;  %v795_v22 = vmul.f32 %v4513_v10, %v724_v35 }
 0x163   : > { %3555 = vmatpush3.bf16.msra.mxu1 %v3789_v9  ;;  %v5545_v63 = vmax.f32 %v4738_v16, 0.0  ;;  %v5544_v14 = vmax.f32 %v4741_v34, 0.0  ;;  %v4754_v18 = vadd.f32 %v4527_v1, %v789_v21  ;;  %v725_v59 = vmul.f32 %v4510_v24, %v4174_v50 }
 0x164   : > { %v3040_v43 = vpack.c.bf16 %v5543_v47, %v5542_v4  ;;  %3556 = vmatprep.subr.bf16.mxu1 %v3791_v25  ;;  %v5547_v6 = vmax.f32 %v4747_v39, 0.0  ;;  %v865_v9 = vadd.f32 %v4527_v1, %v794_v42  ;;  %v866_v35 = vadd.f32 %v4527_v1, %v795_v22  ;;  %3525 = vmatpush3.bf16.msra.mxu0 %v3790_v49 }
 0x165   : > { %5642 = vst [vmem:[#allocation33_spill] sm:$0xff] %v4754_v18  ;;  %v1025_v50 = vpack.c.bf16 %v5544_v14, %v5545_v63  ;;  %v5546_v21 = vmax.f32 %v4754_v18, 0.0  ;;  %v726_v4 = vmul.f32 %v4510_v24, %v4177_v58  ;;  %v796_v47 = vmul.f32 %v4513_v10, %v725_v59  ;;  %3526 = vmatprep.subr.bf16.mxu0 %v3792_v33  ;;  %v3795_v63 = vld [vmem:[%s3901_s27 + $0xc0] sm:$0xff]  }
 0x166   : > { %3507 = vmatmul.mubr.msk.bf16.gmra.mxu1 %vm4583_vm2, %v3040_v43  ;;  %v4776_v42 = vmax.f32 %v865_v9, 0.0  ;;  %v4778_v49 = vmax.f32 %v866_v35, 0.0  ;;  %v1334_v22 = vpack.c.bf16 %v4562_v29, %v5639_v27  ;;  %v3794_v43 = vld [vmem:[%s3901_s27 + $0x80] sm:$0xff]   ;;  %v5650_v29 = vld [vmem:[#allocation21_spill] sm:$0xff] }
 0x167   : > { %3478 = vmatprep.mubr.bf16.mxu0 %v1025_v50  ;;  %3557 = vmatpush3.bf16.msra.mxu1 %v3791_v25  ;;  %v1026_v58 = vpack.c.bf16 %v5546_v21, %v5547_v6  ;;  %v797_v59 = vmul.f32 %v4513_v10, %v726_v4  ;;  %v867_v14 = vadd.f32 %v4527_v1, %v796_v47 }
 0x168   : > { %v5549_v9 = vrot.slane %v4776_v42, 7  ;;  %v5548_v35 = vrot.slane %v4778_v49, 7  ;;  %3558 = vmatprep.subr.bf16.mxu1 %v3793_v36  ;;  %v672_v50 = vmul.f32 %v4510_v24, %v4228_v62  ;;  %v673_v25 = vmul.f32 %v4510_v24, %v4234_v19  ;;  %3527 = vmatpush3.bf16.msra.mxu0 %v3792_v33 }
 0x169   : > { %3479 = vmatmul.mubr.bf16.gmra.mxu0 %v1026_v58  ;;  %v868_v21 = vadd.f32 %v4527_v1, %v797_v59  ;;  %v4797_v4 = vmax.f32 %v867_v14, 0.0  ;;  %v674_v47 = vmul.f32 %v4510_v24, %v4240_v31  ;;  %v746_v6 = vmul.f32 %v4513_v10, %v4518_v60  ;;  %3528 = vmatprep.subr.bf16.mxu0 %v3794_v43  ;;  %v3796_v31 = vld [vmem:[%s3901_s27 + $0x138] sm:$0xff]  }
 0x16a   : > { %v3045_v62 = vpack.c.bf16 %v5548_v35, %v5549_v9  ;;  %3530 = vmatprep.mubr.bf16.mxu0 %v1334_v22  ;;  %v743_v19 = vmul.f32 %v4513_v10, %v672_v50  ;;  %v744_v58 = vmul.f32 %v4513_v10, %v673_v25  ;;  %v1335_v22 = vpack.c.bf16 %v4569_v32, %v4564_v13  ;;  %v5649_v13 = vld [vmem:[#allocation20_spill] sm:$0xff] }
 0x16b   : > { %v4809_v14 = vmax.f32 %v868_v21, 0.0  ;;  %v5554_v59 = vrot.slane %v4797_v4, 7  ;;  %3559 = vmatpush3.bf16.msra.mxu1 %v3793_v36  ;;  %v745_v60 = vmul.f32 %v4513_v10, %v674_v47  ;;  %v4815_v33 = vadd.f32 %v4527_v1, %v746_v6  ;;  %v4828_v36 = vld [vmem:[%s3901_s27 + $0x178] sm:$0xff]  }
 0x16c   : > { %3510 = vmatprep.mubr.msk.bf16.mxu1 %vm4583_vm2, %v3045_v62  ;;  %3560 = vmatprep.subr.bf16.mxu1 %v3795_v63  ;;  %v4822_v21 = vadd.f32 %v4527_v1, %v743_v19  ;;  %v4825_v50 = vadd.f32 %v4527_v1, %v744_v58  ;;  %v1336_v62 = vpack.c.bf16 %v4656_v55, %v4654_v51  ;;  %v3798_v19 = vld [vmem:[%s3901_s27 + $0x130] sm:$0xff]  }
 0x16d   : > { %5643 = vst [vmem:[#allocation34_spill] sm:$0xff] %v4809_v14  ;;  %v5553_v25 = vrot.slane %v4809_v14, 7  ;;  %v4832_v6 = vadd.f32 %v4527_v1, %v745_v60  ;;  %v5555_v47 = vmax.f32 %v4815_v33, 0.0  ;;  %3529 = vmatpush3.bf16.msra.mxu0 %v3794_v43  ;;  %v676_v58 = vmul.f32 %v4510_v24, %v4252_v37 }
 0x16e   : > { %v677_v9 = vmul.f32 %v4510_v24, %v4258_v20  ;;  %3578 = vmatprep.subr.bf16.mxu0 %v3796_v31  ;;  %v678_v35 = vmul.f32 %v4510_v24, %v4264_v23  ;;  %v5644_v37 = vmax.f32 %v4822_v21, 0.0  ;;  %v5645_v20 = vmax.f32 %v4825_v50, 0.0 }
 0x16f   : > { %v3050_v60 = vpack.c.bf16 %v5553_v25, %v5554_v59  ;;  %3561 = vmatpush3.bf16.msra.mxu1 %v3795_v63  ;;  %v5556_v8 = vmax.f32 %v4832_v6, 0.0  ;;  %v1539_v43 = vrot.slane %v5555_v47, 7  ;;  %v747_v63 = vmul.f32 %v4513_v10, %v676_v58 }
 0x170   : > { %v1536_v51 = vrot.slane %v5644_v37, 7  ;;  %v1537_v32 = vrot.slane %v5645_v20, 7  ;;  %3610 = vmatprep.subr.bf16.mxu1 %v4828_v36  ;;  %v748_v25 = vmul.f32 %v4513_v10, %v677_v9  ;;  %v679_v37 = vmul.f32 %v4510_v24, %v4270_v26 }
 0x171   : > { %3511 = vmatmul.mubr.msk.bf16.gmra.mxu1 %vm4583_vm2, %v3050_v60  ;;  %3531 = vmatmul.mubr.bf16.vlgmr.msra.gmra.mxu0 %v1335_v22  ;;  %v1538_v23 = vrot.slane %v5556_v8, 7  ;;  %v749_v59 = vmul.f32 %v4513_v10, %v678_v35  ;;  %v4868_v47 = vadd.f32 %v4527_v1, %v747_v63  ;;  %v3800_v22 = vld [vmem:[%s3901_s27 + $0x128] sm:$0xff]   ;;  %v1337_v60 = vpack.c.bf16 %v4661_v0, %v4658_v57 }
 0x172   : > { %3579 = vmatpush3.bf16.msra.mxu0 %v3796_v31  ;;  %v3103_v20 = vpack.c.bf16 %v1537_v32, %v1536_v51  ;;  %3534 = vmatprep.mubr.bf16.mxu0 %v1336_v62  ;;  %v4871_v9 = vadd.f32 %v4527_v1, %v748_v25  ;;  %v750_v8 = vmul.f32 %v4513_v10, %v679_v37 }
 0x173   : > { %v3108_v58 = vpack.c.bf16 %v1539_v43, %v1538_v23  ;;  %3580 = vmatprep.subr.bf16.mxu0 %v3798_v19  ;;  %v4878_v26 = vadd.f32 %v4527_v1, %v749_v59  ;;  %v5557_v32 = vmax.f32 %v4868_v47, 0.0  ;;  %v704_v35 = vmul.f32 %v4510_v24, %v4428_v2  ;;  %v3799_v23 = vld [vmem:[%s3901_s27 + $0x170] sm:$0xff]  }
 0x174   : > { %3562 = vmatprep.mubr.msk.bf16.mxu1 %vm4583_vm2, %v3103_v20  ;;  %v5559_v51 = vmax.f32 %v4871_v9, 0.0  ;;  %v705_v31 = vmul.f32 %v4510_v24, %v4434_v46  ;;  %v4889_v25 = vadd.f32 %v4527_v1, %v750_v8  ;;  %v706_v62 = vmul.f32 %v4510_v24, %v4440_v30 }
 0x175   : > { %v707_v43 = vmul.f32 %v4510_v24, %v4446_v11  ;;  %v1540_v63 = vrot.slane %v5557_v32, 7  ;;  %v775_v46 = vmul.f32 %v4513_v10, %v704_v35  ;;  %v1338_v32 = vpack.c.bf16 %v4566_v38, %v5639_v27 }
 0x176   : > { %3581 = vmatpush3.bf16.msra.mxu0 %v3798_v19  ;;  %v1541_v2 = vrot.slane %v5559_v51, 7  ;;  %v776_v8 = vmul.f32 %v4513_v10, %v705_v31  ;;  %v5558_v37 = vmax.f32 %v4889_v25, 0.0  ;;  %v777_v30 = vmul.f32 %v4513_v10, %v706_v62  ;;  %v3802_v19 = vld [vmem:[%s3901_s27 + $0x120] sm:$0xff]  }
 0x177   : > { %3582 = vmatprep.subr.bf16.mxu0 %v3800_v22  ;;  %v778_v20 = vmul.f32 %v4513_v10, %v707_v43  ;;  %v4910_v59 = vadd.f32 %v4527_v1, %v775_v46  ;;  %v5646_v31 = vmax.f32 %v4878_v26, 0.0  ;;  %v709_v46 = vmul.f32 %v4510_v24, %v4126_v56 }
 0x178   : > { %v3113_v11 = vpack.c.bf16 %v1541_v2, %v1540_v63  ;;  %v4913_v35 = vadd.f32 %v4527_v1, %v776_v8  ;;  %v1543_v43 = vrot.slane %v5558_v37, 7  ;;  %v4922_v27 = vadd.f32 %v4527_v1, %v777_v30  ;;  %v3801_v8 = vld [vmem:[%s3901_s27 + $0x168] sm:$0xff]   ;;  %v3804_v30 = vld [vmem:[%s3901_s27 + $0x118] sm:$0xff]  }
 0x179   : > { %3563 = vmatmul.mubr.msk.bf16.vlgmr.msra.gmra.mxu1 %vm4583_vm2, %v3108_v58  ;;  %3535 = vmatmul.mubr.bf16.gmra.mxu0 %v1337_v60  ;;  %v1542_v62 = vrot.slane %v5646_v31, 7  ;;  %v4925_v63 = vadd.f32 %v4527_v1, %v778_v20  ;;  %v5560_v2 = vmax.f32 %v4910_v59, 0.0  ;;  %v708_v60 = vmul.f32 %v4510_v24, %v4452_v5 }
 0x17a   : > { %3611 = vmatpush3.bf16.msra.mxu1 %v4828_v36  ;;  %3583 = vmatpush3.bf16.msra.mxu0 %v3800_v22  ;;  %v5562_v58 = vmax.f32 %v4913_v35, 0.0  ;;  %v5561_v20 = vmax.f32 %v4922_v27, 0.0  ;;  %v710_v22 = vmul.f32 %v4510_v24, %v4129_v52  ;;  %v780_v31 = vmul.f32 %v4513_v10, %v709_v46  ;;  %v5647_v36 = vld [vmem:[#allocation17_spill] sm:$0xff]  ;;  %v3803_v46 = vld [vmem:[%s3901_s27 + $0x160] sm:$0xff]  }
 0x17b   : > { %3612 = vmatprep.subr.bf16.mxu1 %v3799_v23  ;;  %3566 = vmatprep.mubr.msk.bf16.mxu1 %vm4583_vm2, %v3113_v11  ;;  %v1544_v5 = vrot.slane %v5560_v2, 7  ;;  %v779_v11 = vmul.f32 %v4513_v10, %v708_v60  ;;  %v3118_v37 = vpack.c.bf16 %v1543_v43, %v1542_v62  ;;  %v1339_v51 = vpack.c.bf16 %v4728_v17, %v4719_v12 }
 0x17c   : > { %3584 = vmatprep.subr.bf16.mxu0 %v3802_v19  ;;  %3538 = vmatprep.mubr.bf16.mxu0 %v1338_v32  ;;  %v1545_v56 = vrot.slane %v5562_v58, 7  ;;  %v711_v52 = vmul.f32 %v4510_v24, %v5647_v36  ;;  %v781_v32 = vmul.f32 %v4513_v10, %v710_v22  ;;  %v4955_v2 = vrot.slane %v5561_v20, 7  ;;  %v3806_v58 = vld [vmem:[%s3901_s27 + $0x110] sm:$0xff]  }
 0x17d   : > { %v1340_v60 = vpack.c.bf16 %v4778_v49, %v4776_v42  ;;  %v4960_v62 = vadd.f32 %v4527_v1, %v779_v11  ;;  %v4963_v43 = vadd.f32 %v4527_v1, %v780_v31  ;;  %v664_v31 = vmul.f32 %v4510_v24, %v5649_v13  ;;  %v5652_v11 = vld [vmem:[#allocation23_spill] sm:$0xff] }
 0x17e   : > { %3613 = vmatpush3.bf16.msra.mxu1 %v3799_v23  ;;  %3585 = vmatpush3.bf16.msra.mxu0 %v3802_v19  ;;  %v3123_v36 = vpack.c.bf16 %v1545_v56, %v1544_v5  ;;  %v5648_v23 = vmax.f32 %v4925_v63, 0.0  ;;  %v782_v22 = vmul.f32 %v4513_v10, %v711_v52  ;;  %v4970_v20 = vadd.f32 %v4527_v1, %v781_v32  ;;  %v5651_v32 = vld [vmem:[#allocation22_spill] sm:$0xff]  ;;  %v3808_v52 = vld [vmem:[%s3901_s27 + $0x108] sm:$0xff]  }
 0x17f   : > { %3614 = vmatprep.subr.bf16.mxu1 %v3801_v8  ;;  %3586 = vmatprep.subr.bf16.mxu0 %v3804_v30  ;;  %v5569_v18 = vmax.f32 %v4960_v62, 0.0  ;;  %v665_v5 = vmul.f32 %v4510_v24, %v5650_v29  ;;  %v667_v13 = vmul.f32 %v4510_v24, %v5652_v11  ;;  %v1341_v29 = vpack.c.bf16 %v4809_v14, %v4797_v4 }
 0x180   : > { %v1547_v19 = vrot.slane %v5648_v23, 7  ;;  %v4982_v56 = vadd.f32 %v4527_v1, %v782_v22  ;;  %v666_v23 = vmul.f32 %v4510_v24, %v5651_v32  ;;  %v3805_v32 = vld [vmem:[%s3901_s27 + $0x158] sm:$0xff]   ;;  %v5653_v11 = vmax.f32 %v4963_v43, 0.0 }
 0x181   : > { %3567 = vmatmul.mubr.msk.bf16.gmra.mxu1 %vm4583_vm2, %v3118_v37  ;;  %3539 = vmatmul.mubr.bf16.gmra.mxu0 %v1339_v51  ;;  %v1548_v37 = vrot.slane %v5569_v18, 7  ;;  %v735_v51 = vmul.f32 %v4513_v10, %v664_v31  ;;  %v736_v22 = vmul.f32 %v4513_v10, %v665_v5  ;;  %v738_v3 = vmul.f32 %v4513_v10, %v667_v13 }
 0x182   : > { %3615 = vmatpush3.bf16.msra.mxu1 %v3801_v8  ;;  %3587 = vmatpush3.bf16.msra.mxu0 %v3804_v30  ;;  %v1549_v8 = vrot.slane %v5653_v11, 7  ;;  %v5575_v30 = vmax.f32 %v4982_v56, 0.0  ;;  %v737_v14 = vmul.f32 %v4513_v10, %v666_v23  ;;  %v3128_v31 = vpack.c.bf16 %v1547_v19, %v4955_v2 }
 0x183   : > { %3616 = vmatprep.subr.bf16.mxu1 %v3803_v46  ;;  %3570 = vmatprep.mubr.msk.bf16.mxu1 %vm4583_vm2, %v3123_v36  ;;  %v806_v5 = vadd.f32 %v4527_v1, %v735_v51  ;;  %v807_v36 = vadd.f32 %v4527_v1, %v736_v22  ;;  %v5654_v18 = vmax.f32 %v4970_v20, 0.0  ;;  %v809_v13 = vadd.f32 %v4527_v1, %v738_v3  ;;  %v3807_v22 = vld [vmem:[%s3901_s27 + $0x150] sm:$0xff]  }
 0x184   : > { %3588 = vmatprep.subr.bf16.mxu0 %v3806_v58  ;;  %3542 = vmatprep.mubr.bf16.mxu0 %v1340_v60  ;;  %v1551_v11 = vrot.slane %v5575_v30, 7  ;;  %v808_v23 = vadd.f32 %v4527_v1, %v737_v14  ;;  %v5655_v60 = vld [vmem:[#allocation24_spill] sm:$0xff]  ;;  %v3133_v12 = vpack.c.bf16 %v1549_v8, %v1548_v37  ;;  %v669_v30 = vmul.f32 %v4510_v24, %v5656_v53 }
 0x185   : > { %v1550_v40 = vrot.slane %v5654_v18, 7  ;;  %v870_v2 = vmax.f32 %v806_v5, 0.0  ;;  %v871_v19 = vmax.f32 %v807_v36, 0.0  ;;  %v668_v51 = vmul.f32 %v4510_v24, %v5655_v60  ;;  %v5658_v5 = vld [vmem:[#allocation27_spill] sm:$0xff] }
 0x186   : > { %3617 = vmatpush3.bf16.msra.mxu1 %v3803_v46  ;;  %3589 = vmatpush3.bf16.msra.mxu0 %v3806_v58  ;;  %v872_v18 = vmax.f32 %v808_v23, 0.0  ;;  %v873_v38 = vmax.f32 %v809_v13, 0.0  ;;  %v5657_v58 = vld [vmem:[#allocation26_spill] sm:$0xff]  ;;  %v671_v36 = vmul.f32 %v4510_v24, %v5658_v5  ;;  %v740_v8 = vmul.f32 %v4513_v10, %v669_v30 }
 0x187   : > { %3618 = vmatprep.subr.bf16.mxu1 %v3805_v32  ;;  %3590 = vmatprep.subr.bf16.mxu0 %v3808_v52  ;;  %v1770_v14 = vpack.c.bf16 %v871_v19, %v870_v2  ;;  %v739_v3 = vmul.f32 %v4513_v10, %v668_v51  ;;  %v670_v46 = vmul.f32 %v4510_v24, %v5657_v58  ;;  %v3809_v2 = vld [vmem:[%s3901_s27 + $0x148] sm:$0xff]   ;;  %v3812_v19 = vld [vmem:[%s3901_s27 + $0x1b8] sm:$0xff]   ;;  %v5662_v58 = vld [vmem:[#allocation6_spill] sm:$0xff] }
 0x188   : > { %v3138_v37 = vpack.c.bf16 %v1551_v11, %v1550_v40  ;;  %v742_v13 = vmul.f32 %v4513_v10, %v671_v36  ;;  %v1771_v60 = vpack.c.bf16 %v873_v38, %v872_v18  ;;  %v5659_v40 = vld [vmem:[#allocation3_spill] sm:$0xff]  ;;  %v5660_v11 = vld [vmem:[#allocation4_spill] sm:$0xff]  ;;  %v5661_v18 = vld [vmem:[#allocation5_spill] sm:$0xff]  ;;  %v5663_v36 = vmax.f32 %v4822_v21, 0.0 }
 0x189   : > { %3571 = vmatmul.mubr.msk.bf16.gmra.mxu1 %vm4583_vm2, %v3128_v31  ;;  %3543 = vmatmul.mubr.bf16.gmra.mxu0 %v1341_v29  ;;  %v810_v53 = vadd.f32 %v4527_v1, %v739_v3  ;;  %v741_v23 = vmul.f32 %v4513_v10, %v670_v46  ;;  %v811_v29 = vadd.f32 %v4527_v1, %v740_v8  ;;  %v3811_v5 = vld [vmem:[%s3901_s27 + $0x140] sm:$0xff]   ;;  %v5664_v8 = vmax.f32 %v4825_v50, 0.0  ;;  %v5665_v50 = vld [vmem:[#allocation7_spill] sm:$0xff] }
 0x18a   : > { %3619 = vmatpush3.bf16.msra.mxu1 %v3805_v32  ;;  %3591 = vmatpush3.bf16.msra.mxu0 %v3808_v52  ;;  %v696_v32 = vmul.f32 %v4510_v24, %v5659_v40  ;;  %v813_v31 = vadd.f32 %v4527_v1, %v742_v13  ;;  %v698_v3 = vmul.f32 %v4510_v24, %v5661_v18 }
 0x18b   : > { %3620 = vmatprep.subr.bf16.mxu1 %v3807_v22  ;;  %3574 = vmatprep.mubr.msk.bf16.mxu1 %vm4583_vm2, %v3133_v12  ;;  %v874_v52 = vmax.f32 %v810_v53, 0.0  ;;  %v812_v30 = vadd.f32 %v4527_v1, %v741_v23  ;;  %v697_v12 = vmul.f32 %v4510_v24, %v5660_v11  ;;  %v875_v51 = vmax.f32 %v811_v29, 0.0  ;;  %v3814_v29 = vld [vmem:[%s3901_s27 + $0x1b0] sm:$0xff]  }
 0x18c   : > { %3592 = vmatprep.subr.bf16.mxu0 %v3810_v7  ;;  %3594 = vmatprep.mubr.bf16.mxu0 %v1770_v14  ;;  %v767_v38 = vmul.f32 %v4513_v10, %v696_v32  ;;  %v699_v46 = vmul.f32 %v4510_v24, %v5662_v58  ;;  %v1956_v53 = vpack.c.bf16 %v5664_v8, %v5663_v36  ;;  %v877_v13 = vmax.f32 %v813_v31, 0.0  ;;  %v5666_v31 = vld [vmem:[#allocation8_spill] sm:$0xff] }
 0x18d   : > { %v768_v14 = vmul.f32 %v4513_v10, %v697_v12  ;;  %v876_v23 = vmax.f32 %v812_v30, 0.0  ;;  %v1772_v40 = vpack.c.bf16 %v875_v51, %v874_v52  ;;  %v700_v30 = vmul.f32 %v4510_v24, %v5665_v50  ;;  %v3815_v8 = vld [vmem:[%s3901_s27 + $0x1f0] sm:$0xff]  }
 0x18e   : > { %3621 = vmatpush3.bf16.msra.mxu1 %v3807_v22  ;;  %3593 = vmatpush3.bf16.msra.mxu0 %v3810_v7  ;;  %v838_v32 = vadd.f32 %v4527_v1, %v767_v38  ;;  %v769_v22 = vmul.f32 %v4513_v10, %v698_v3  ;;  %v770_v21 = vmul.f32 %v4513_v10, %v699_v46  ;;  %v5667_v52 = vmax.f32 %v4832_v6, 0.0  ;;  %v3813_v38 = vld [vmem:[%s3901_s27 + $0x1f8] sm:$0xff]  }
 0x18f   : > { %3622 = vmatprep.subr.bf16.mxu1 %v3809_v2  ;;  %3642 = vmatprep.subr.bf16.mxu0 %v3812_v19  ;;  %v839_v7 = vadd.f32 %v4527_v1, %v768_v14  ;;  %v701_v11 = vmul.f32 %v4510_v24, %v5666_v31  ;;  %v5668_v12 = vmax.f32 %v4815_v33, 0.0  ;;  %v771_v58 = vmul.f32 %v4513_v10, %v700_v30  ;;  %v5669_v46 = vld [vmem:[#allocation9_spill] sm:$0xff]  ;;  %v5670_v14 = vld [vmem:[#allocation10_spill] sm:$0xff] }
 0x190   : > { %v902_v18 = vmax.f32 %v838_v32, 0.0  ;;  %v841_v6 = vadd.f32 %v4527_v1, %v770_v21  ;;  %v702_v33 = vmul.f32 %v4510_v24, %v5669_v46  ;;  %v703_v36 = vmul.f32 %v4510_v24, %v5670_v14 }
 0x191   : > { %3575 = vmatmul.mubr.msk.bf16.gmra.mxu1 %vm4583_vm2, %v3138_v37  ;;  %3595 = vmatmul.mubr.bf16.vlgmr.msra.gmra.mxu0 %v1771_v60  ;;  %v1957_v51 = vpack.c.bf16 %v5668_v12, %v5667_v52  ;;  %v3816_v37 = vld [vmem:[%s3901_s27 + $0x1a8] sm:$0xff]   ;;  %v1773_v60 = vpack.c.bf16 %v877_v13, %v876_v23  ;;  %v903_v3 = vmax.f32 %v839_v7, 0.0  ;;  %v5672_v23 = vmax.f32 %v4871_v9, 0.0 }
 0x192   : > { %3623 = vmatpush3.bf16.msra.mxu1 %v3809_v2  ;;  %3643 = vmatpush3.bf16.msra.mxu0 %v3812_v19  ;;  %v772_v2 = vmul.f32 %v4513_v10, %v701_v11  ;;  %v840_v19 = vadd.f32 %v4527_v1, %v769_v22  ;;  %v5674_v32 = vrot.slane %v4658_v57, 7  ;;  %v3818_v22 = vld [vmem:[%s3901_s27 + $0x1a0] sm:$0xff]   ;;  %v905_v50 = vmax.f32 %v841_v6, 0.0  ;;  %v3817_v12 = vld [vmem:[%s3901_s27 + $0x1e8] sm:$0xff]  }
 0x193   : > { %3624 = vmatprep.subr.bf16.mxu1 %v3811_v5  ;;  %3626 = vmatprep.mubr.bf16.mxu1 %v1956_v53  ;;  %v5671_v53 = vmax.f32 %v4868_v47, 0.0  ;;  %v1774_v21 = vpack.c.bf16 %v903_v3, %v902_v18  ;;  %v773_v9 = vmul.f32 %v4513_v10, %v702_v33  ;;  %v774_v30 = vmul.f32 %v4513_v10, %v703_v36  ;;  %v3820_v18 = vld [vmem:[%s3901_s27 + $0x198] sm:$0xff]  }
 0x194   : > { %3644 = vmatprep.subr.bf16.mxu0 %v3814_v29  ;;  %3598 = vmatprep.mubr.bf16.mxu0 %v1772_v40  ;;  %v5673_v40 = vrot.slane %v4656_v55, 7  ;;  %v904_v47 = vmax.f32 %v840_v19, 0.0  ;;  %v5675_v31 = vrot.slane %v4728_v17, 7  ;;  %v5676_v11 = vrot.slane %v4776_v42, 7 }
 0x195   : > { %v1958_v13 = vpack.c.bf16 %v5672_v23, %v5671_v53  ;;  %v5682_v19 = vmax.f32 %v4889_v25, 0.0  ;;  %v5684_v33 = vrot.slane %v4797_v4, 7  ;;  %v845_v36 = vadd.f32 %v4527_v1, %v774_v30  ;;  %v3819_v23 = vld [vmem:[%s3901_s27 + $0x1e0] sm:$0xff]  }
 0x196   : > { %3625 = vmatpush3.bf16.msra.mxu1 %v3811_v5  ;;  %3645 = vmatpush3.bf16.msra.mxu0 %v3814_v29  ;;  %v5086_v7 = vpack.c.bf16 %v5674_v32, %v5673_v40  ;;  %v842_v5 = vadd.f32 %v4527_v1, %v771_v58  ;;  %v843_v29 = vadd.f32 %v4527_v1, %v772_v2  ;;  %v5681_v2 = vmax.f32 %v4878_v26, 0.0 }
 0x197   : > { %3674 = vmatprep.subr.bf16.mxu1 %v3813_v38  ;;  %3646 = vmatprep.subr.bf16.mxu0 %v3816_v37  ;;  %v5097_v52 = vpack.c.bf16 %v5676_v11, %v5675_v31  ;;  %v5685_v26 = vmax.f32 %v4741_v34, 0.0  ;;  %v5686_v25 = vmax.f32 %v4747_v39, 0.0  ;;  %v5688_v40 = vmax.f32 %v4913_v35, 0.0  ;;  %v3822_v34 = vld [vmem:[%s3901_s27 + $0x190] sm:$0xff]   ;;  %v3821_v35 = vld [vmem:[%s3901_s27 + $0x1d8] sm:$0xff]  }
 0x198   : > { %v1959_v6 = vpack.c.bf16 %v5682_v19, %v5681_v2  ;;  %v907_v46 = vmax.f32 %v843_v29, 0.0  ;;  %v2528_v39 = vpack.c.bf16 %v4797_v4, %v4778_v49  ;;  %v5689_v29 = vld [vmem:[#allocation2_spill] sm:$0xff]  ;;  %v5696_v2 = vld [vmem:[#allocation28_spill] sm:$0xff] }
 0x199   : > { %3627 = vmatmul.mubr.bf16.vlgmr.msra.gmra.mxu1 %v1957_v51  ;;  %3599 = vmatmul.mubr.bf16.gmra.mxu0 %v1773_v60  ;;  %v5677_v51 = vmax.f32 %v4665_v41, 0.0  ;;  %v5678_v60 = vmax.f32 %v4674_v45, 0.0  ;;  %v906_v41 = vmax.f32 %v842_v5, 0.0  ;;  %v5683_v45 = vrot.slane %v4778_v49, 7 }
 0x19a   : > { %3675 = vmatpush3.bf16.msra.mxu1 %v3813_v38  ;;  %3647 = vmatpush3.bf16.msra.mxu0 %v3816_v37  ;;  %v5679_v38 = vmax.f32 %v4679_v44, 0.0  ;;  %v5680_v37 = vmax.f32 %v4738_v16, 0.0  ;;  %v1775_v44 = vpack.c.bf16 %v905_v50, %v904_v47  ;;  %v844_v16 = vadd.f32 %v4527_v1, %v773_v9  ;;  %v3824_v47 = vld [vmem:[%s3901_s27 + $0x188] sm:$0xff]  }
 0x19b   : > { %3676 = vmatprep.subr.bf16.mxu1 %v3815_v8  ;;  %3630 = vmatprep.mubr.bf16.mxu1 %v1958_v13  ;;  %v5105_v3 = vpack.c.bf16 %v5678_v60, %v5677_v51  ;;  %v5121_v14 = vpack.c.bf16 %v5684_v33, %v5683_v45  ;;  %v5129_v53 = vpack.c.bf16 %v5686_v25, %v5685_v26  ;;  %v5687_v13 = vmax.f32 %v4910_v59, 0.0  ;;  %v3840_v45 = vld [vmem:[%s4502_s9] ss:$0 sm:$0xff] }
 0x19c   : > { %v5111_v58 = vpack.c.bf16 %v5680_v37, %v5679_v38  ;;  %3648 = vmatprep.subr.bf16.mxu0 %v3818_v22  ;;  %3602 = vmatprep.mubr.bf16.mxu0 %v1774_v21  ;;  %v2527_v21 = vpack.c.bf16 %v4776_v42, %v4728_v17  ;;  %v1776_v5 = vpack.c.bf16 %v907_v46, %v906_v41  ;;  %v5690_v50 = vmax.f32 %v4922_v27, 0.0  ;;  %v3826_v38 = vld [vmem:[%s3901_s27 + $0x180] sm:$0xff]  }
 0x19d   : > { %v1960_v32 = vpack.c.bf16 %v5688_v40, %v5687_v13  ;;  %v695_v59 = vmul.f32 %v4510_v24, %v5689_v29  ;;  %v5691_v9 = vmax.f32 %v4925_v63, 0.0  ;;  %v5693_v51 = vmax.f32 %v4963_v43, 0.0  ;;  %v3828_v63 = vld [vmem:[%s3901_s27 + $0x238] sm:$0xff]  }
 0x19e   : > { %3677 = vmatpush3.bf16.msra.mxu1 %v3815_v8  ;;  %3649 = vmatpush3.bf16.msra.mxu0 %v3818_v22  ;;  %v908_v8 = vmax.f32 %v844_v16, 0.0  ;;  %v909_v22 = vmax.f32 %v845_v36, 0.0  ;;  %v5695_v43 = vmax.f32 %v4982_v56, 0.0  ;;  %v687_v19 = vmul.f32 %v4510_v24, %v5696_v2  ;;  %v3841_v36 = vld [vmem:[%s4508_s12] ss:$0 sm:$0xff]  ;;  %v5703_v40 = vld [vmem:[#allocation29_spill] sm:$0xff] }
 0x19f   : > { %3678 = vmatprep.subr.bf16.mxu1 %v3817_v12  ;;  %3650 = vmatprep.subr.bf16.mxu0 %v3820_v18  ;;  %v1961_v30 = vpack.c.bf16 %v5691_v9, %v5690_v50  ;;  %v766_v11 = vmul.f32 %v4513_v10, %v695_v59  ;;  %v3825_v10 = vld [vmem:[%s3901_s27 + $0x1c8] sm:$0xff]   ;;  %v5697_v41 = vmax.f32 %v4547_v28, 0.0  ;;  %v3832_v9 = vld [vmem:[%s3901_s27 + $0x218] sm:$0xff]  }
 0x1a0   : > { %v1777_v31 = vpack.c.bf16 %v909_v22, %v908_v8  ;;  %v758_v33 = vmul.f32 %v3840_v45, %v687_v19  ;;  %v3830_v28 = vld [vmem:[%s3901_s27 + $0x228] sm:$0xff]   ;;  %v5705_v8 = vld [vmem:[#allocation13_spill] sm:$0xff]  ;;  %v5716_v19 = vld [vmem:[#allocation12_spill] sm:$0xff] }
 0x1a1   : > { %3631 = vmatmul.mubr.bf16.gmra.mxu1 %v1959_v6  ;;  %3603 = vmatmul.mubr.bf16.gmra.mxu0 %v1775_v44  ;;  %v5157_v27 = vadd.f32 %v4527_v1, %v766_v11  ;;  %v3827_v6 = vld [vmem:[%s3901_s27 + $0x1c0] sm:$0xff]   ;;  %v5699_v44 = vld [vmem:[#allocation19_spill] sm:$0xff]  ;;  %v5706_v22 = vrot.slane %v5705_v8, 7 }
 0x1a2   : > { %3679 = vmatpush3.bf16.msra.mxu1 %v3817_v12  ;;  %3651 = vmatpush3.bf16.msra.mxu0 %v3820_v18  ;;  %v3823_v12 = vld [vmem:[%s3901_s27 + $0x1d0] sm:$0xff]   ;;  %v5692_v18 = vmax.f32 %v4960_v62, 0.0  ;;  %v5694_v62 = vmax.f32 %v4970_v20, 0.0  ;;  %v727_v16 = vmul.f32 %v4510_v24, %v5699_v44  ;;  %v829_v26 = vadd.f32 %v3841_v36, %v758_v33  ;;  %v5715_v2 = vld [vmem:[#allocation11_spill] sm:$0xff] }
 0x1a3   : > { %3680 = vmatprep.subr.bf16.mxu1 %v3819_v23  ;;  %3634 = vmatprep.mubr.bf16.mxu1 %v1960_v32  ;;  %v901_v1 = vmax.f32 %v5157_v27, 0.0  ;;  %v3829_v20 = vld [vmem:[%s3901_s27 + $0x230] sm:$0xff]   ;;  %v5704_v32 = vmax.f32 %v5703_v40, 0.0 }
 0x1a4   : > { %3652 = vmatprep.subr.bf16.mxu0 %v3822_v34  ;;  %3606 = vmatprep.mubr.bf16.mxu0 %v1776_v5  ;;  %v1962_v60 = vpack.c.bf16 %v5693_v51, %v5692_v18  ;;  %v1963_v37 = vpack.c.bf16 %v5695_v43, %v5694_v62  ;;  %v798_v25 = vmul.f32 %v3840_v45, %v727_v16  ;;  %v3831_v5 = vld [vmem:[%s3901_s27 + $0x220] sm:$0xff]  }
 0x1a5   : > { %v2144_v56 = vrot.slane %v901_v1, 7  ;;  %v5712_v18 = vld [vmem:[#allocation18_spill] sm:$0xff] }
 0x1a6   : > { %3681 = vmatpush3.bf16.msra.mxu1 %v3819_v23  ;;  %3653 = vmatpush3.bf16.msra.mxu0 %v3822_v34  ;;  %v5701_v23 = vld [vmem:[#allocation15_spill] sm:$0xff]  ;;  %v5204_v50 = vadd.f32 %v3841_v36, %v798_v25  ;;  %v719_v51 = vmul.f32 %v4510_v24, %v5712_v18  ;;  %v5713_v24 = vld [vmem:[#allocation34_spill] sm:$0xff] }
 0x1a7   : > { %3682 = vmatprep.subr.bf16.mxu1 %v3821_v35  ;;  %3654 = vmatprep.subr.bf16.mxu0 %v3824_v47  ;;  %v5702_v13 = vmax.f32 %v5701_v23, 0.0  ;;  %v5714_v62 = vrot.slane %v5713_v24, 7 }
 0x1a9   : > { %3635 = vmatmul.mubr.bf16.gmra.mxu1 %v1961_v30  ;;  %3607 = vmatmul.mubr.bf16.gmra.mxu0 %v1777_v31  ;;  %v2338_v34 = vpack.c.bf16 %v5704_v32, %v5702_v13  ;;  %v5710_v30 = vld [vmem:[#allocation30_spill] sm:$0xff] }
 0x1aa   : > { %3683 = vmatpush3.bf16.msra.mxu1 %v3821_v35  ;;  %3655 = vmatpush3.bf16.msra.mxu0 %v3824_v47  ;;  %v5709_v35 = vld [vmem:[#allocation16_spill] sm:$0xff]  ;;  %v893_v47 = vmax.f32 %v829_v26, 0.0  ;;  %v5711_v31 = vmax.f32 %v5710_v30, 0.0 }
 0x1ab   : > { %3684 = vmatprep.subr.bf16.mxu1 %v3823_v12  ;;  %3638 = vmatprep.mubr.bf16.mxu1 %v1962_v60  ;;  %v3833_v60 = vld [vmem:[%s3901_s27 + $0x210] sm:$0xff]  }
 0x1ac   : > { %3656 = vmatprep.subr.bf16.mxu0 %v3826_v38  ;;  %3658 = vmatprep.mubr.msk.bf16.mxu0 %vm4583_vm2, %v4598_v48  ;;  %v5698_v48 = vmax.f32 %v4550_v61, 0.0  ;;  %v5700_v61 = vrot.slane %v4661_v0, 7  ;;  %v2339_v11 = vpack.c.bf16 %v893_v47, %v5711_v31 }
 0x1ae   : > { %3685 = vmatpush3.bf16.msra.mxu1 %v3823_v12  ;;  %3657 = vmatpush3.bf16.msra.mxu0 %v3826_v38  ;;  %v2336_v46 = vpack.c.bf16 %v5698_v48, %v5697_v41  ;;  %v933_v12 = vmax.f32 %v5204_v50, 0.0 }
 0x1af   : > { %3686 = vmatprep.subr.bf16.mxu1 %v3825_v10  ;;  %3706 = vmatprep.subr.bf16.mxu0 %v3828_v63 }
 0x1b0   : > { %v2145_v38 = vrot.slane %v933_v12, 7 }
 0x1b1   : > { %3639 = vmatmul.mubr.bf16.gmra.mxu1 %v1963_v37  ;;  %3659 = vmatmul.mubr.msk.bf16.vlgmr.msra.gmra.mxu0 %vm4583_vm2, %v4687_v15  ;;  %v3230_v15 = vpack.c.bf16 %v2144_v56, %v5700_v61 }
 0x1b2   : > { %3687 = vmatpush3.bf16.msra.mxu1 %v3825_v10  ;;  %3707 = vmatpush3.bf16.msra.mxu0 %v3828_v63  ;;  %v790_v10 = vmul.f32 %v3840_v45, %v719_v51  ;;  %v3250_v43 = vpack.c.bf16 %v2145_v38, %v5714_v62 }
 0x1b3   : > { %3688 = vmatprep.subr.bf16.mxu1 %v3827_v6  ;;  %3690 = vmatprep.mubr.bf16.mxu1 %v2336_v46  ;;  %v5719_v46 = vld [vmem:[#allocation14_spill] sm:$0xff] }
 0x1b4   : > { %3708 = vmatprep.subr.bf16.mxu0 %v3829_v20  ;;  %3662 = vmatprep.mubr.msk.bf16.mxu0 %vm4583_vm2, %v5086_v7  ;;  %v5707_v7 = vld [vmem:[#allocation32_spill] sm:$0xff]  ;;  %v861_v37 = vadd.f32 %v3841_v36, %v790_v10 }
 0x1b5   : > { %v5708_v29 = vrot.slane %v5707_v7, 7  ;;  %v2526_v54 = vpack.c.bf16 %v5707_v7, %v5705_v8 }
 0x1b6   : > { %3689 = vmatpush3.bf16.msra.mxu1 %v3827_v6  ;;  %3709 = vmatpush3.bf16.msra.mxu0 %v3829_v20  ;;  %v2522_v6 = vpack.c.bf16 %v5716_v19, %v5715_v2 }
 0x1b7   : > { %3738 = vmatprep.subr.bf16.mxu1 %v3828_v63  ;;  %3710 = vmatprep.subr.bf16.mxu0 %v3830_v28  ;;  %v3235_v59 = vpack.c.bf16 %v5708_v29, %v5706_v22 }
 0x1b9   : > { %3691 = vmatmul.mubr.bf16.vlgmr.msra.gmra.mxu1 %v5709_v35  ;;  %3663 = vmatmul.mubr.msk.bf16.gmra.mxu0 %vm4583_vm2, %v3230_v15 }
 0x1ba   : > { %3746 = vmatpush3.bf16.msra.mxu1 %v3828_v63  ;;  %3711 = vmatpush3.bf16.msra.mxu0 %v3830_v28  ;;  %v3834_v63 = vld [vmem:[%s3901_s27 + $0x208] sm:$0xff]  }
 0x1bb   : > { %3739 = vmatprep.subr.bf16.mxu1 %v3829_v20  ;;  %3694 = vmatprep.mubr.bf16.mxu1 %v2338_v34 }
 0x1bc   : > { %3712 = vmatprep.subr.bf16.mxu0 %v3831_v5  ;;  %3666 = vmatprep.mubr.msk.bf16.mxu0 %vm4583_vm2, %v3235_v59 }
 0x1be   : > { %3747 = vmatpush3.bf16.msra.mxu1 %v3829_v20  ;;  %3713 = vmatpush3.bf16.msra.mxu0 %v3831_v5  ;;  %v5720_v20 = vld [vmem:[#allocation31_spill] sm:$0xff] }
 0x1bf   : > { %3740 = vmatprep.subr.bf16.mxu1 %v3830_v28  ;;  %3714 = vmatprep.subr.bf16.mxu0 %v3832_v9  ;;  %v2523_v56 = vpack.c.bf16 %v5720_v20, %v5719_v46 }
 0x1c1   : > { %3695 = vmatmul.mubr.bf16.gmra.mxu1 %v2339_v11  ;;  %3667 = vmatmul.mubr.msk.bf16.gmra.mxu0 %vm4583_vm2, %v5097_v52  ;;  %v3835_v52 = vld [vmem:[%s3901_s27 + $0x200] sm:$0xff]  }
 0x1c2   : > { %3748 = vmatpush3.bf16.msra.mxu1 %v3830_v28  ;;  %3715 = vmatpush3.bf16.msra.mxu0 %v3832_v9 }
 0x1c3   : > { %3741 = vmatprep.subr.bf16.mxu1 %v3831_v5  ;;  %3698 = vmatprep.mubr.bf16.mxu1 %v5105_v3  ;;  %v925_v3 = vmax.f32 %v861_v37, 0.0 }
 0x1c4   : > { %3716 = vmatprep.subr.bf16.mxu0 %v3833_v60  ;;  %3670 = vmatprep.mubr.msk.bf16.mxu0 %vm4583_vm2, %v5121_v14  ;;  %v5717_v14 = vld [vmem:[#allocation33_spill] sm:$0xff] }
 0x1c5   : > { %v5718_v41 = vmax.f32 %v5717_v14, 0.0 }
 0x1c6   : > { %3749 = vmatpush3.bf16.msra.mxu1 %v3831_v5  ;;  %3717 = vmatpush3.bf16.msra.mxu0 %v3833_v60 }
 0x1c7   : > { %3742 = vmatprep.subr.bf16.mxu1 %v3832_v9  ;;  %3718 = vmatprep.subr.bf16.mxu0 %v3834_v63  ;;  %v2343_v48 = vpack.c.bf16 %v925_v3, %v5718_v41 }
 0x1c9   : > { %3699 = vmatmul.mubr.bf16.gmra.mxu1 %v5111_v58  ;;  %3671 = vmatmul.mubr.msk.bf16.gmra.mxu0 %vm4583_vm2, %v3250_v43  ;;  %v2524_v58 = vpack.c.bf16 %v4658_v57, %v4656_v55  ;;  %v2529_v55 = vpack.c.bf16 %v933_v12, %v5713_v24 }
 0x1ca   : > { %3750 = vmatpush3.bf16.msra.mxu1 %v3832_v9  ;;  %3719 = vmatpush3.bf16.msra.mxu0 %v3834_v63 }
 0x1cb   : > { %3743 = vmatprep.subr.bf16.mxu1 %v3833_v60  ;;  %3702 = vmatprep.mubr.bf16.mxu1 %v5129_v53  ;;  %v2525_v53 = vpack.c.bf16 %v901_v1, %v4661_v0 }
 0x1cc   : > { %3720 = vmatprep.subr.bf16.mxu0 %v3835_v52  ;;  %3722 = vmatprep.mubr.bf16.mxu0 %v2522_v6 }
 0x1ce   : > { %3751 = vmatpush3.bf16.msra.mxu1 %v3833_v60  ;;  %3721 = vmatpush3.bf16.msra.mxu0 %v3835_v52 }
 0x1cf   : > { %3744 = vmatprep.subr.bf16.mxu1 %v3834_v63 }
 0x1d1   : > { %3703 = vmatmul.mubr.bf16.gmra.mxu1 %v2343_v48  ;;  %3723 = vmatmul.mubr.bf16.vlgmr.msra.gmra.mxu0 %v2523_v56 }
 0x1d2   : > { %3752 = vmatpush3.bf16.msra.mxu1 %v3834_v63  ;;  %3730 = vmatprep.mubr.bf16.mxu1 %v2526_v54 }
 0x1d3   : > { %3745 = vmatprep.subr.bf16.mxu1 %v3835_v52  ;;  %3726 = vmatprep.mubr.bf16.mxu0 %v2524_v58 }
 0x1d6   : > { %3753 = vmatpush3.bf16.msra.mxu1 %v3835_v52 }
 0x1d9   : > { %3731 = vmatmul.mubr.bf16.vlgmr.msra.gmra.mxu1 %v2527_v21  ;;  %3727 = vmatmul.mubr.bf16.gmra.mxu0 %v2525_v53 }
 0x1da   : > { %3734 = vmatprep.mubr.bf16.mxu1 %v2528_v39 }
 0x1e1   : > { %3735 = vmatmul.mubr.bf16.gmra.mxu1 %v2529_v55 }
 0x20e   : > { %v3468_v57 = vpop.f32.mrf.mxu0 }
 0x210   : > { %v1126_v45 = vpop.f32.mrf.mxu0 }
 0x211   : > { %v3500_v33 = vpop.f32.mrf.mxu1 }
 0x212   : > { %v1280_v44 = vadd.f32 %v3500_v33, %v3468_v57  ;;  %v3469_v16 = vpop.f32.mrf.mxu0 }
 0x213   : > { %v1271_v27 = vpop.f32.mrf.mxu1 }
 0x214   : > { %v1272_v0 = vadd.f32 %v1271_v27, %v1126_v45  ;;  %v1129_v1 = vpop.f32.mrf.mxu0 }
 0x215   : > { %v3501_v28 = vpop.f32.mrf.mxu1 }
 0x216   : > { %v1283_v61 = vadd.f32 %v3501_v28, %v3469_v16 }
 0x217   : > { %v1274_v42 = vpop.f32.mrf.mxu1 }
 0x218   : > { %v3472_v17 = vpop.f32.mrf.mxu0  ;;  %v1275_v21 = vadd.f32 %v1274_v42, %v1129_v1 }
 0x21a   : > { %v1142_v15 = vpop.f32.mrf.mxu0 }
 0x21c   : > { %v3473_v36 = vpop.f32.mrf.mxu0 }
 0x21e   : > { %v3504_v49 = vpop.f32.mrf.mxu1  ;;  %v1145_v4 = vpop.f32.mrf.mxu0 }
 0x21f   : > { %v1296_v39 = vadd.f32 %v3504_v49, %v3472_v17 }
 0x220   : > { %v1287_v26 = vpop.f32.mrf.mxu1 }
 0x221   : > { %v3476_v25 = vpop.f32.mrf.mxu0  ;;  %v1288_v23 = vadd.f32 %v1287_v26, %v1142_v15 }
 0x222   : > { %v3505_v13 = vpop.f32.mrf.mxu1 }
 0x223   : > { %v1158_v40 = vpop.f32.mrf.mxu0  ;;  %v1299_v32 = vadd.f32 %v3505_v13, %v3473_v36 }
 0x224   : > { %v1290_v34 = vpop.f32.mrf.mxu1 }
 0x225   : > { %v3477_v5 = vpop.f32.mrf.mxu0  ;;  %v1291_v8 = vadd.f32 %v1290_v34, %v1145_v4 }
 0x226   : > { %v3508_v22 = vpop.f32.mrf.mxu1 }
 0x227   : > { %v1161_v7 = vpop.f32.mrf.mxu0  ;;  %v1312_v29 = vadd.f32 %v3508_v22, %v3476_v25 }
 0x228   : > { %v1303_v59 = vpop.f32.mrf.mxu1 }
 0x229   : > { %v1304_v35 = vadd.f32 %v1303_v59, %v1158_v40  ;;  %v3480_v47 = vpop.f32.mrf.mxu0 }
 0x22a   : > { %v3509_v50 = vpop.f32.mrf.mxu1 }
 0x22b   : > { %v1315_v9 = vadd.f32 %v3509_v50, %v3477_v5  ;;  %v1174_v30 = vpop.f32.mrf.mxu0 }
 0x22c   : > { %v1306_v31 = vpop.f32.mrf.mxu1 }
 0x22d   : > { %v1307_v11 = vadd.f32 %v1306_v31, %v1161_v7  ;;  %v3481_v12 = vpop.f32.mrf.mxu0 }
 0x22f   : > { %v1177_v18 = vpop.f32.mrf.mxu0 }
 0x231   : > { %v3512_v51 = vpop.f32.mrf.mxu1  ;;  %v3532_v60 = vpop.f32.mrf.mxu0 }
 0x232   : > { %v1328_v38 = vadd.f32 %v3512_v51, %v3480_v47  ;;  %v1506_v10 = vadd.f32 %v3532_v60, %v1280_v44 }
 0x233   : > { %v1319_v63 = vpop.f32.mrf.mxu1  ;;  %v1441_v24 = vpop.f32.mrf.mxu0 }
 0x234   : > { %v1320_v62 = vadd.f32 %v1319_v63, %v1174_v30  ;;  %v1504_v43 = vadd.f32 %v1441_v24, %v1272_v0 }
 0x235   : > { %v3513_v37 = vpop.f32.mrf.mxu1  ;;  %v3533_v52 = vpop.f32.mrf.mxu0 }
 0x236   : > { %v1331_v2 = vadd.f32 %v3513_v37, %v3481_v12  ;;  %v1507_v19 = vadd.f32 %v3533_v52, %v1283_v61 }
 0x237   : > { %v1322_v6 = vpop.f32.mrf.mxu1  ;;  %v1444_v3 = vpop.f32.mrf.mxu0 }
 0x238   : > { %v1323_v14 = vadd.f32 %v1322_v6, %v1177_v18  ;;  %v1505_v41 = vadd.f32 %v1444_v3, %v1275_v21 }
 0x239   : > { %v3564_v48 = vpop.f32.mrf.mxu1  ;;  %v3536_v46 = vpop.f32.mrf.mxu0 }
 0x23a   : > { %v1756_v20 = vadd.f32 %v3564_v48, %v1506_v10  ;;  %v1510_v56 = vadd.f32 %v3536_v46, %v1296_v39 }
 0x23b   : > { %v1691_v54 = vpop.f32.mrf.mxu1  ;;  %v1457_v58 = vpop.f32.mrf.mxu0 }
 0x23c   : > { %v5250_v53 = vadd.f32 %v1691_v54, %v1504_v43  ;;  %v1508_v55 = vadd.f32 %v1457_v58, %v1288_v23 }
 0x23d   : > { %v3565_v57 = vpop.f32.mrf.mxu1  ;;  %v3537_v45 = vpop.f32.mrf.mxu0 }
 0x23e   : > { %v5252_v33 = vadd.f32 %v3565_v57, %v1507_v19  ;;  %v1511_v44 = vadd.f32 %v3537_v45, %v1299_v32 }
 0x23f   : > { %v1694_v16 = vpop.f32.mrf.mxu1  ;;  %v1460_v27 = vpop.f32.mrf.mxu0 }
 0x240   : > { %v5254_v0 = vadd.f32 %v1694_v16, %v1505_v41  ;;  %v1509_v1 = vadd.f32 %v1460_v27, %v1291_v8 }
 0x241   : > { %v3568_v28 = vpop.f32.mrf.mxu1  ;;  %v3540_v61 = vpop.f32.mrf.mxu0 }
 0x242   : > { %v1760_v17 = vadd.f32 %v3568_v28, %v1510_v56  ;;  %v1514_v42 = vadd.f32 %v3540_v61, %v1312_v29 }
 0x243   : > { %v1707_v21 = vpop.f32.mrf.mxu1  ;;  %v1473_v15 = vpop.f32.mrf.mxu0 }
 0x244   : > { %v5256_v36 = vadd.f32 %v1707_v21, %v1508_v55  ;;  %v1512_v49 = vadd.f32 %v1473_v15, %v1304_v35 }
 0x245   : > { %v3569_v4 = vpop.f32.mrf.mxu1  ;;  %v3541_v39 = vpop.f32.mrf.mxu0 }
 0x246   : > { %v5258_v26 = vadd.f32 %v3569_v4, %v1511_v44  ;;  %v1515_v25 = vadd.f32 %v3541_v39, %v1315_v9 }
 0x247   : > { %v1710_v23 = vpop.f32.mrf.mxu1  ;;  %v1476_v13 = vpop.f32.mrf.mxu0 }
 0x248   : > { %v5260_v40 = vadd.f32 %v1710_v23, %v1509_v1  ;;  %v1513_v32 = vadd.f32 %v1476_v13, %v1307_v11 }
 0x249   : > { %v3572_v34 = vpop.f32.mrf.mxu1  ;;  %v3544_v5 = vpop.f32.mrf.mxu0 }
 0x24a   : > { %v1764_v8 = vadd.f32 %v3572_v34, %v1514_v42  ;;  %v1518_v22 = vadd.f32 %v3544_v5, %v1328_v38 }
 0x24b   : > { %v1723_v7 = vpop.f32.mrf.mxu1  ;;  %v1489_v29 = vpop.f32.mrf.mxu0 }
 0x24c   : > { %v5262_v59 = vadd.f32 %v1723_v7, %v1512_v49  ;;  %v1516_v47 = vadd.f32 %v1489_v29, %v1320_v62 }
 0x24d   : > { %v3573_v35 = vpop.f32.mrf.mxu1  ;;  %v3545_v50 = vpop.f32.mrf.mxu0 }
 0x24e   : > { %v5264_v30 = vadd.f32 %v3573_v35, %v1515_v25  ;;  %v1519_v31 = vadd.f32 %v3545_v50, %v1331_v2 }
 0x24f   : > { %v1726_v9 = vpop.f32.mrf.mxu1  ;;  %v1492_v12 = vpop.f32.mrf.mxu0 }
 0x250   : > { %v5266_v18 = vadd.f32 %v1726_v9, %v1513_v32  ;;  %v1517_v51 = vadd.f32 %v1492_v12, %v1323_v14 }
 0x251   : > { %v3576_v11 = vpop.f32.mrf.mxu1  ;;  %v3596_v60 = vpop.f32.mrf.mxu0 }
 0x252   : > { %v1768_v10 = vadd.f32 %v3576_v11, %v1518_v22  ;;  %v5268_v63 = vadd.f32 %v3596_v60, %v1756_v20 }
 0x253   : > { %v1739_v38 = vpop.f32.mrf.mxu1  ;;  %v5270_v24 = vpop.f32.mrf.mxu0 }
 0x254   : > { %v5272_v43 = vadd.f32 %v1739_v38, %v1516_v47 }
 0x255   : > { %v3577_v62 = vpop.f32.mrf.mxu1  ;;  %v5274_v37 = vpop.f32.mrf.mxu0 }
 0x256   : > { %v5276_v52 = vadd.f32 %v3577_v62, %v1519_v31 }
 0x257   : > { %v1742_v2 = vpop.f32.mrf.mxu1  ;;  %v1880_v19 = vpop.f32.mrf.mxu0 }
 0x258   : > { %5721 = vst [vmem:[#allocation17_spill] sm:$0xff] %v5276_v52  ;;  %v5278_v6 = vadd.f32 %v1742_v2, %v1517_v51  ;;  %v1941_v52 = vadd.f32 %v1880_v19, %v5254_v0 }
 0x259   : > { %v5280_v3 = vpop.f32.mrf.mxu1  ;;  %v3600_v14 = vpop.f32.mrf.mxu0 }
 0x25a   : > { %5722 = vst [vmem:[#allocation20_spill] sm:$0xff] %v5278_v6  ;;  %v5282_v41 = vadd.f32 %v3600_v14, %v1760_v17 }
 0x25b   : > { %v2063_v48 = vpop.f32.mrf.mxu1  ;;  %v5284_v46 = vpop.f32.mrf.mxu0 }
 0x25c   : > { %v1944_v0 = vadd.f32 %v5284_v46, %v5256_v36 }
 0x25d   : > { %v5286_v20 = vpop.f32.mrf.mxu1  ;;  %v5288_v56 = vpop.f32.mrf.mxu0 }
 0x25e   : > { %v1947_v36 = vadd.f32 %v5288_v56, %v5258_v26 }
 0x25f   : > { %v2066_v54 = vpop.f32.mrf.mxu1  ;;  %v1896_v58 = vpop.f32.mrf.mxu0 }
 0x261   : > { %v5290_v55 = vpop.f32.mrf.mxu1  ;;  %v3604_v57 = vpop.f32.mrf.mxu0 }
 0x262   : > { %v5292_v45 = vadd.f32 %v3604_v57, %v1764_v8 }
 0x263   : > { %v5294_v44 = vpop.f32.mrf.mxu1  ;;  %v5296_v16 = vpop.f32.mrf.mxu0 }
 0x265   : > { %v5298_v27 = vpop.f32.mrf.mxu1  ;;  %v5300_v1 = vpop.f32.mrf.mxu0 }
 0x267   : > { %v5302_v28 = vpop.f32.mrf.mxu1  ;;  %v5304_v61 = vpop.f32.mrf.mxu0 }
 0x269   : > { %v5306_v17 = vpop.f32.mrf.mxu1  ;;  %v3608_v42 = vpop.f32.mrf.mxu0 }
 0x26a   : > { %v5308_v21 = vadd.f32 %v3608_v42, %v1768_v10 }
 0x26b   : > { %v5310_v15 = vpop.f32.mrf.mxu1  ;;  %v5312_v49 = vpop.f32.mrf.mxu0 }
 0x26c   : > { %5723 = vst [vmem:[#allocation21_spill] sm:$0xff] %v5308_v21 }
 0x26d   : > { %v5314_v4 = vpop.f32.mrf.mxu1  ;;  %v5316_v39 = vpop.f32.mrf.mxu0 }
 0x26e   : > { %5724 = vst [vmem:[#allocation22_spill] sm:$0xff] %v5316_v39  ;;  %v1940_v39 = vadd.f32 %v5270_v24, %v5250_v53  ;;  %v2128_v53 = vadd.f32 %v5280_v3, %v5268_v63 }
 0x26f   : > { %v5318_v25 = vpop.f32.mrf.mxu1  ;;  %v5320_v23 = vpop.f32.mrf.mxu0 }
 0x270   : > { %5725 = vst [vmem:[#allocation23_spill] sm:$0xff] %v5320_v23 }
 0x271   : > { %v5322_v13 = vpop.f32.mrf.mxu1  ;;  %v3660_v32 = vpop.f32.mrf.mxu0 }
 0x272   : > { %5726 = vst [vmem:[#allocation24_spill] sm:$0xff] %v5322_v13 }
 0x273   : > { %v5324_v34 = vpop.f32.mrf.mxu1  ;;  %v2257_v5 = vpop.f32.mrf.mxu0 }
 0x274   : > { %5727 = vst [vmem:[#allocation25_spill] sm:$0xff] %v5324_v34 }
 0x275   : > { %v5326_v8 = vpop.f32.mrf.mxu1  ;;  %v3661_v22 = vpop.f32.mrf.mxu0 }
 0x276   : > { %5728 = vst [vmem:[#allocation26_spill] sm:$0xff] %v5326_v8 }
 0x277   : > { %v5328_v7 = vpop.f32.mrf.mxu1  ;;  %v2260_v29 = vpop.f32.mrf.mxu0 }
 0x278   : > { %5729 = vst [vmem:[#allocation27_spill] sm:$0xff] %v5328_v7 }
 0x279   : > { %v3692_v47 = vpop.f32.mrf.mxu1  ;;  %v5330_v35 = vpop.f32.mrf.mxu0 }
 0x27b   : > { %v2443_v50 = vpop.f32.mrf.mxu1  ;;  %v2273_v31 = vpop.f32.mrf.mxu0 }
 0x27d   : > { %v3693_v9 = vpop.f32.mrf.mxu1  ;;  %v5332_v12 = vpop.f32.mrf.mxu0 }
 0x27f   : > { %v2446_v51 = vpop.f32.mrf.mxu1  ;;  %v2276_v11 = vpop.f32.mrf.mxu0 }
 0x281   : > { %v5334_v60 = vpop.f32.mrf.mxu1  ;;  %v5336_v10 = vpop.f32.mrf.mxu0 }
 0x282   : > { %5730 = vst [vmem:[#allocation3_spill] sm:$0xff] %v5336_v10 }
 0x283   : > { %v2459_v38 = vpop.f32.mrf.mxu1  ;;  %v5338_v62 = vpop.f32.mrf.mxu0 }
 0x285   : > { %v5340_v2 = vpop.f32.mrf.mxu1  ;;  %v5342_v14 = vpop.f32.mrf.mxu0 }
 0x286   : > { %5731 = vst [vmem:[#allocation4_spill] sm:$0xff] %v5342_v14 }
 0x287   : > { %v2462_v57 = vpop.f32.mrf.mxu1  ;;  %v5344_v42 = vpop.f32.mrf.mxu0 }
 0x289   : > { %v5346_v8 = vpop.f32.mrf.mxu1  ;;  %v5348_v13 = vpop.f32.mrf.mxu0 }
 0x28a   : > { %5732 = vst [vmem:[#allocation5_spill] sm:$0xff] %v5346_v8  ;;  %5733 = vst [vmem:[#allocation6_spill] sm:$0xff] %v5348_v13  ;;  %v1943_v13 = vadd.f32 %v5274_v37, %v5252_v33  ;;  %v2126_v8 = vadd.f32 %v2063_v48, %v1940_v39  ;;  %v2322_v37 = vadd.f32 %v3660_v32, %v2128_v53 }
 0x28b   : > { %v5350_v21 = vpop.f32.mrf.mxu1  ;;  %v5352_v7 = vpop.f32.mrf.mxu0  ;;  %v1948_v32 = vadd.f32 %v5296_v16, %v5262_v59 }
 0x28c   : > { %5734 = vst [vmem:[#allocation7_spill] sm:$0xff] %v5350_v21  ;;  %5735 = vst [vmem:[#allocation8_spill] sm:$0xff] %v5352_v7  ;;  %v2127_v21 = vadd.f32 %v2066_v54, %v1941_v52  ;;  %v2320_v24 = vadd.f32 %v2257_v5, %v2126_v8  ;;  %v2129_v33 = vadd.f32 %v5286_v20, %v1943_v13 }
 0x28d   : > { %v5357_v34 = vpop.f32.mrf.mxu1  ;;  %v5359_v10 = vpop.f32.mrf.mxu0  ;;  %v2130_v54 = vadd.f32 %v5294_v44, %v1944_v0  ;;  %v2132_v44 = vadd.f32 %v5290_v55, %v5282_v41 }
 0x28e   : > { %5736 = vst [vmem:[#allocation9_spill] sm:$0xff] %v5357_v34  ;;  %5737 = vst [vmem:[#allocation10_spill] sm:$0xff] %v5359_v10  ;;  %v2321_v19 = vadd.f32 %v2260_v29, %v2127_v21  ;;  %v1945_v10 = vadd.f32 %v1896_v58, %v5260_v40  ;;  %v2323_v39 = vadd.f32 %v3661_v22, %v2129_v33 }
 0x28f   : > { %v5361_v14 = vpop.f32.mrf.mxu1  ;;  %v5363_v23 = vpop.f32.mrf.mxu0  ;;  %v2506_v63 = vadd.f32 %v2443_v50, %v2320_v24  ;;  %v2508_v21 = vadd.f32 %v3692_v47, %v2322_v37  ;;  %v2324_v5 = vadd.f32 %v2273_v31, %v2130_v54  ;;  %v1949_v47 = vadd.f32 %v5304_v61, %v5266_v18  ;;  %v5739_v37 = vld [vmem:[#allocation20_spill] sm:$0xff] }
 0x290   : > { %5738 = vst [vmem:[#allocation2_spill] sm:$0xff] %v5363_v23  ;;  %v2507_v3 = vadd.f32 %v2446_v51, %v2321_v19  ;;  %v2131_v46 = vadd.f32 %v5302_v28, %v1945_v10  ;;  %v2509_v26 = vadd.f32 %v3693_v9, %v2323_v39  ;;  %v2326_v41 = vadd.f32 %v5330_v35, %v2132_v44  ;;  %v5741_v39 = vld [vmem:[#allocation3_spill] sm:$0xff]  ;;  %v5745_v44 = vld [vmem:[#allocation17_spill] sm:$0xff] }
 0x291   : > { %v5367_v6 = vpop.f32.mrf.mxu1  ;;  %v3724_v7 = vpop.f32.mrf.mxu0  ;;  %v2510_v55 = vadd.f32 %v2459_v38, %v2324_v5  ;;  %v1951_v61 = vadd.f32 %v5300_v1, %v5264_v30  ;;  %v2135_v35 = vadd.f32 %v5318_v25, %v1949_v47 }
 0x292   : > { %v2325_v56 = vadd.f32 %v2276_v11, %v2131_v46  ;;  %v5393_v28 = vadd.f32 %v3724_v7, %v2508_v21  ;;  %v2134_v7 = vadd.f32 %v5310_v15, %v1948_v32  ;;  %v2512_v0 = vadd.f32 %v5334_v60, %v2326_v41 }
 0x293   : > { %v5374_v34 = vpop.f32.mrf.mxu1  ;;  %v2629_v23 = vpop.f32.mrf.mxu0  ;;  %v2329_v1 = vadd.f32 %v5344_v42, %v2135_v35  ;;  %v5754_v35 = vld [vmem:[#allocation26_spill] sm:$0xff] }
 0x294   : > { %v5385_v20 = vadd.f32 %v2629_v23, %v2506_v63  ;;  %v2133_v23 = vadd.f32 %v5298_v27, %v1947_v36  ;;  %v2511_v10 = vadd.f32 %v2462_v57, %v2325_v56  ;;  %v2328_v15 = vadd.f32 %v5338_v62, %v2134_v7  ;;  %v5748_v56 = vld [vmem:[#allocation5_spill] sm:$0xff] }
 0x295   : > { %v5377_v52 = vpop.f32.mrf.mxu1  ;;  %v3725_v48 = vpop.f32.mrf.mxu0  ;;  %v1952_v57 = vadd.f32 %v5312_v49, %v5272_v43  ;;  %v2137_v62 = vadd.f32 %v5314_v4, %v1951_v61  ;;  %v5743_v43 = vld [vmem:[#allocation25_spill] sm:$0xff]  ;;  %v2515_v42 = vadd.f32 %v5361_v14, %v2329_v1  ;;  %v5746_v4 = vld [vmem:[#allocation22_spill] sm:$0xff] }
 0x296   : > { %v5401_v59 = vadd.f32 %v3725_v48, %v2509_v26  ;;  %v2327_v11 = vadd.f32 %v5332_v12, %v2133_v23  ;;  %v2136_v12 = vadd.f32 %v5306_v17, %v5292_v45  ;;  %v5740_v48 = vld [vmem:[#allocation23_spill] sm:$0xff]  ;;  %v1955_v32 = vadd.f32 %v5746_v4, %v5745_v44  ;;  %v5749_v23 = vld [vmem:[#allocation8_spill] sm:$0xff] }
 0x297   : > { %v5383_v40 = vpop.f32.mrf.mxu1  ;;  %v2632_v58 = vpop.f32.mrf.mxu0  ;;  %v1953_v54 = vadd.f32 %v5740_v48, %v5739_v37  ;;  %v2138_v49 = vadd.f32 %v5743_v43, %v1952_v57  ;;  %v5753_v14 = vld [vmem:[#allocation2_spill] sm:$0xff] }
 0x298   : > { %v5387_v13 = vadd.f32 %v2632_v58, %v2507_v3  ;;  %v2513_v30 = vadd.f32 %v5340_v2, %v2327_v11  ;;  %v2330_v63 = vadd.f32 %v5741_v39, %v2136_v12  ;;  %v5742_v3 = vld [vmem:[#allocation7_spill] sm:$0xff]  ;;  %v5744_v2 = vld [vmem:[#allocation4_spill] sm:$0xff]  ;;  %v5752_v11 = vld [vmem:[#allocation9_spill] sm:$0xff] }
 0x299   : > { %v3732_v8 = vpop.f32.mrf.mxu1  ;;  %v3728_v22 = vpop.f32.mrf.mxu0  ;;  %v2514_v45 = vadd.f32 %v5742_v3, %v2328_v15  ;;  %v2331_v58 = vadd.f32 %v5744_v2, %v2137_v62  ;;  %v2332_v47 = vadd.f32 %v5749_v23, %v2138_v49 }
 0x29a   : > { %v2708_v29 = vadd.f32 %v5387_v13, %v5385_v20  ;;  %v2698_v25 = vadd.f32 %v3728_v22, %v2512_v0  ;;  %v5747_v22 = vld [vmem:[#allocation27_spill] sm:$0xff]  ;;  %v5755_v0 = vld [vmem:[#allocation6_spill] sm:$0xff] }
 0x29b   : > { %v2661_v50 = vpop.f32.mrf.mxu1  ;;  %v2645_v31 = vpop.f32.mrf.mxu0  ;;  %v2139_v26 = vadd.f32 %v5747_v22, %v1953_v54 }
 0x29c   : > { %v2709_v16 = vadd.f32 %v2708_v29, %v5393_v28  ;;  %v5406_v27 = vadd.f32 %v2645_v31, %v2510_v55  ;;  %v2700_v21 = vadd.f32 %v2661_v50, %v2514_v45  ;;  %v2516_v29 = vadd.f32 %v5748_v56, %v2330_v63  ;;  %v5750_v55 = vld [vmem:[#allocation21_spill] sm:$0xff] }
 0x29d   : > { %v3733_v9 = vpop.f32.mrf.mxu1  ;;  %v3729_v51 = vpop.f32.mrf.mxu0  ;;  %v2333_v50 = vadd.f32 %v5753_v14, %v2139_v26 }
 0x29e   : > { %v2710_v18 = vadd.f32 %v2709_v16, %v5401_v59  ;;  %v2699_v17 = vadd.f32 %v3729_v51, %v2513_v30  ;;  %v5751_v16 = vld [vmem:[#allocation24_spill] sm:$0xff]  ;;  %v5756_v30 = vld [vmem:[#allocation10_spill] sm:$0xff] }
 0x29f   : > { %v2664_v38 = vpop.f32.mrf.mxu1  ;;  %v2648_v53 = vpop.f32.mrf.mxu0  ;;  %v2140_v7 = vadd.f32 %v5751_v16, %v5750_v55 }
 0x2a0   : > { %v2711_v24 = vadd.f32 %v2710_v18, %v5406_v27  ;;  %v5415_v19 = vadd.f32 %v2648_v53, %v2511_v10  ;;  %v2701_v31 = vadd.f32 %v2664_v38, %v2515_v42  ;;  %v2517_v10 = vadd.f32 %v5752_v11, %v2331_v58 }
 0x2a1   : > { %v3736_v33 = vpop.f32.mrf.mxu1  ;;  %v2702_v18 = vadd.f32 %v3732_v8, %v2516_v29  ;;  %v2141_v53 = vadd.f32 %v5754_v35, %v1955_v32  ;;  %v2334_v15 = vadd.f32 %v5755_v0, %v2140_v7 }
 0x2a2   : > { %v2712_v60 = vadd.f32 %v2711_v24, %v5415_v19  ;;  %v2518_v24 = vadd.f32 %v5374_v34, %v2332_v47  ;;  %v2703_v12 = vadd.f32 %v3733_v9, %v2517_v10 }
 0x2a3   : > { %v2677_v46 = vpop.f32.mrf.mxu1  ;;  %v2335_v1 = vadd.f32 %v5756_v30, %v2141_v53  ;;  %v2520_v48 = vadd.f32 %v5367_v6, %v2334_v15 }
 0x2a4   : > { %v2713_v36 = vadd.f32 %v2712_v60, %v2698_v25  ;;  %v2519_v60 = vadd.f32 %v5383_v40, %v2333_v50  ;;  %v2704_v62 = vadd.f32 %v2677_v46, %v2518_v24 }
 0x2a5   : > { %v3737_v51 = vpop.f32.mrf.mxu1  ;;  %v2521_v39 = vadd.f32 %v5377_v52, %v2335_v1  ;;  %v2706_v63 = vadd.f32 %v3736_v33, %v2520_v48 }
 0x2a6   : > { %v2714_v5 = vadd.f32 %v2713_v36, %v2699_v17 }
 0x2a7   : > { %v2680_v38 = vpop.f32.mrf.mxu1  ;;  %v2707_v45 = vadd.f32 %v3737_v51, %v2521_v39 }
 0x2a8   : > { %v2715_v41 = vadd.f32 %v2714_v5, %v2700_v21  ;;  %v2705_v54 = vadd.f32 %v2680_v38, %v2519_v60 }
 0x2aa   : > { %v2716_v61 = vadd.f32 %v2715_v41, %v2701_v31 }
 0x2ac   : > { %v2717_v57 = vadd.f32 %v2716_v61, %v2702_v18 }
 0x2ae   : > { %v2718_v37 = vadd.f32 %v2717_v57, %v2703_v12 }
 0x2b0   : > { %v2719_v8 = vadd.f32 %v2718_v37, %v2704_v62 }
 0x2b2   : > { %v2720_v3 = vadd.f32 %v2719_v8, %v2705_v54 }
 0x2b4   : > { %v2721_v36 = vadd.f32 %v2720_v3, %v2706_v63 }
 0x2b6   : > { %v2722_v34 = vadd.f32 %v2721_v36, %v2707_v45 }
 0x2b8   : > { %v2723_v9 = vrot.slane %v2722_v34, 4 }
 0x2ba   : > { %v2724_v43 = vadd.f32 %v2723_v9, %v2722_v34 }
 0x2bc   : > { %v2725_v49 = vrot.slane %v2724_v43, 2 }
 0x2be   : > { %v2726_v2 = vadd.f32 %v2725_v49, %v2724_v43 }
 0x2c0   : > { %v2727_v58 = vrot.slane %v2726_v2, 1 }
 0x2c2   : > { %v2728_v42 = vadd.f32 %v2727_v58, %v2726_v2 }
 0x2c4   : > { %v2730_v40 = vmul.f32 0.0078125, %v2728_v42 }
 0x2c6   : > { %v2731_v46 = vsub.f32 %v5385_v20, %v2730_v40  ;;  %v2732_v6 = vsub.f32 %v5387_v13, %v2730_v40  ;;  %v2733_v5 = vsub.f32 %v5393_v28, %v2730_v40  ;;  %v2734_v52 = vsub.f32 %v5401_v59, %v2730_v40 }
 0x2c7   : > { %v2735_v33 = vsub.f32 %v5406_v27, %v2730_v40  ;;  %v2736_v44 = vsub.f32 %v5415_v19, %v2730_v40  ;;  %v2737_v4 = vsub.f32 %v2698_v25, %v2730_v40  ;;  %v2738_v32 = vsub.f32 %v2699_v17, %v2730_v40 }
 0x2c8   : > { %v2739_v22 = vsub.f32 %v2700_v21, %v2730_v40  ;;  %v2740_v26 = vsub.f32 %v2701_v31, %v2730_v40  ;;  %v2741_v56 = vsub.f32 %v2702_v18, %v2730_v40  ;;  %v2742_v29 = vsub.f32 %v2703_v12, %v2730_v40 }
 0x2c9   : > { %v2743_v23 = vsub.f32 %v2704_v62, %v2730_v40  ;;  %v2744_v47 = vsub.f32 %v2705_v54, %v2730_v40  ;;  %v2745_v41 = vsub.f32 %v2706_v63, %v2730_v40  ;;  %v2746_v20 = vsub.f32 %v2707_v45, %v2730_v40 }
 0x2ca   : > { %v2747_v55 = vmul.f32 %v2731_v46, %v2731_v46  ;;  %v2748_v13 = vmul.f32 %v2732_v6, %v2732_v6  ;;  %v2749_v16 = vmul.f32 %v2733_v5, %v2733_v5  ;;  %v2750_v7 = vmul.f32 %v2734_v52, %v2734_v52 }
 0x2cb   : > { %v2751_v51 = vmul.f32 %v2735_v33, %v2735_v33  ;;  %v2752_v11 = vmul.f32 %v2736_v44, %v2736_v44  ;;  %v2753_v25 = vmul.f32 %v2737_v4, %v2737_v4  ;;  %v2754_v21 = vmul.f32 %v2738_v32, %v2738_v32 }
 0x2cc   : > { %v2763_v28 = vadd.f32 %v2748_v13, %v2747_v55  ;;  %v2755_v10 = vmul.f32 %v2739_v22, %v2739_v22  ;;  %v2756_v50 = vmul.f32 %v2740_v26, %v2740_v26  ;;  %v2757_v61 = vmul.f32 %v2741_v56, %v2741_v56  ;;  %v3300_v55 = vld [vmem:[%s319_s15] ss:$0 sm:$0xff] }
 0x2cd   : > { %v2758_v53 = vmul.f32 %v2742_v29, %v2742_v29  ;;  %v2759_v15 = vmul.f32 %v2743_v23, %v2743_v23  ;;  %v2760_v12 = vmul.f32 %v2744_v47, %v2744_v47  ;;  %v2761_v38 = vmul.f32 %v2745_v41, %v2745_v41 }
 0x2ce   : > { %v2764_v59 = vadd.f32 %v2763_v28, %v2749_v16  ;;  %v2762_v1 = vmul.f32 %v2746_v20, %v2746_v20 }
 0x2d0   : > { %v2765_v27 = vadd.f32 %v2764_v59, %v2750_v7 }
 0x2d2   : > { %v2766_v19 = vadd.f32 %v2765_v27, %v2751_v51 }
 0x2d4   : > { %v2767_v17 = vadd.f32 %v2766_v19, %v2752_v11  ;;  %v3301_v19 = vld [vmem:[%s322_s18] ss:$0 sm:$0xff] }
 0x2d6   : > { %v2768_v31 = vadd.f32 %v2767_v17, %v2753_v25 }
 0x2d8   : > { %v2769_v14 = vadd.f32 %v2768_v31, %v2754_v21 }
 0x2da   : > { %v2770_v18 = vadd.f32 %v2769_v14, %v2755_v10 }
 0x2dc   : > { %v2771_v35 = vadd.f32 %v2770_v18, %v2756_v50 }
 0x2de   : > { %v2772_v0 = vadd.f32 %v2771_v35, %v2757_v61 }
 0x2e0   : > { %v2773_v24 = vadd.f32 %v2772_v0, %v2758_v53 }
 0x2e2   : > { %v2774_v57 = vadd.f32 %v2773_v24, %v2759_v15 }
 0x2e4   : > { %v2775_v30 = vadd.f32 %v2774_v57, %v2760_v12 }
 0x2e6   : > { %v2776_v60 = vadd.f32 %v2775_v30, %v2761_v38 }
 0x2e8   : > { %v2777_v62 = vadd.f32 %v2776_v60, %v2762_v1 }
 0x2ea   : > { %v2778_v37 = vrot.slane %v2777_v62, 4 }
 0x2ec   : > { %v2779_v48 = vadd.f32 %v2778_v37, %v2777_v62 }
 0x2ee   : > { %v2780_v54 = vrot.slane %v2779_v48, 2 }
 0x2f0   : > { %v2781_v8 = vadd.f32 %v2780_v54, %v2779_v48 }
 0x2f2   : > { %v2782_v39 = vrot.slane %v2781_v8, 1 }
 0x2f4   : > { %v2783_v63 = vadd.f32 %v2782_v39, %v2781_v8 }
 0x2f6   : > { %v2784_v3 = vmul.f32 0.0078125, %v2783_v63 }
 0x2f8   : > { %v2785_v45 = vadd.f32 1e-05, %v2784_v3 }
 0x2fa   : > { %3838 = vrsqrt.f32 %v2785_v45 }
 0x307   : > { %v3839_v36 = vpop.eup %3838 }
 0x308   : > { %v2787_v34 = vmul.f32 %v3839_v36, %v2731_v46  ;;  %v2788_v9 = vmul.f32 %v3839_v36, %v2732_v6  ;;  %v2789_v43 = vmul.f32 %v3839_v36, %v2733_v5  ;;  %v2790_v49 = vmul.f32 %v3839_v36, %v2734_v52 }
 0x309   : > { %v2791_v2 = vmul.f32 %v3839_v36, %v2735_v33  ;;  %v2792_v58 = vmul.f32 %v3839_v36, %v2736_v44  ;;  %v2793_v42 = vmul.f32 %v3839_v36, %v2737_v4  ;;  %v2794_v40 = vmul.f32 %v3839_v36, %v2738_v32 }
 0x30a   : > { %v2795_v13 = vmul.f32 %v3839_v36, %v2739_v22  ;;  %v2796_v16 = vmul.f32 %v3839_v36, %v2740_v26  ;;  %v2797_v28 = vmul.f32 %v3839_v36, %v2741_v56  ;;  %v2798_v7 = vmul.f32 %v3839_v36, %v2742_v29 }
 0x30b   : > { %v2799_v59 = vmul.f32 %v3839_v36, %v2743_v23  ;;  %v2800_v51 = vmul.f32 %v3839_v36, %v2744_v47  ;;  %v2801_v46 = vmul.f32 %v3839_v36, %v2745_v41  ;;  %v2802_v6 = vmul.f32 %v3839_v36, %v2746_v20 }
 0x30c   : > { %v2810_v5 = vmul.f32 %v3300_v55, %v2787_v34  ;;  %v2811_v52 = vmul.f32 %v3300_v55, %v2788_v9  ;;  %v2812_v33 = vmul.f32 %v3300_v55, %v2789_v43  ;;  %v2813_v44 = vmul.f32 %v3300_v55, %v2790_v49 }
 0x30d   : > { %v2814_v4 = vmul.f32 %v3300_v55, %v2791_v2  ;;  %v2815_v32 = vmul.f32 %v3300_v55, %v2792_v58  ;;  %v2816_v27 = vmul.f32 %v3300_v55, %v2793_v42  ;;  %v2817_v11 = vmul.f32 %v3300_v55, %v2794_v40 }
 0x30e   : > { %v2818_v25 = vmul.f32 %v3300_v55, %v2795_v13  ;;  %v2819_v17 = vmul.f32 %v3300_v55, %v2796_v16  ;;  %v2820_v22 = vmul.f32 %v3300_v55, %v2797_v28  ;;  %v2821_v26 = vmul.f32 %v3300_v55, %v2798_v7 }
 0x30f   : > { %v2822_v56 = vmul.f32 %v3300_v55, %v2799_v59  ;;  %v2823_v29 = vmul.f32 %v3300_v55, %v2800_v51  ;;  %v2824_v23 = vmul.f32 %v3300_v55, %v2801_v46  ;;  %v2825_v47 = vmul.f32 %v3300_v55, %v2802_v6 }
 0x310   : > { %v2833_v41 = vadd.f32 %v3301_v19, %v2810_v5  ;;  %v2834_v20 = vadd.f32 %v3301_v19, %v2811_v52  ;;  %v2835_v21 = vadd.f32 %v3301_v19, %v2812_v33  ;;  %v2836_v31 = vadd.f32 %v3301_v19, %v2813_v44 }
 0x311   : > { %v2837_v10 = vadd.f32 %v3301_v19, %v2814_v4  ;;  %v2838_v14 = vadd.f32 %v3301_v19, %v2815_v32  ;;  %v2839_v50 = vadd.f32 %v3301_v19, %v2816_v27  ;;  %v2840_v18 = vadd.f32 %v3301_v19, %v2817_v11 }
 0x312   : > { %v2841_v61 = vadd.f32 %v3301_v19, %v2818_v25  ;;  %v2842_v35 = vadd.f32 %v3301_v19, %v2819_v17  ;;  %v2843_v53 = vadd.f32 %v3301_v19, %v2820_v22  ;;  %v2844_v0 = vadd.f32 %v3301_v19, %v2821_v26  ;;  %2849 = vst [vmem:[%s5466_s24] sm:$0xff] %v2833_v41 }
 0x313   : > { %2850 = vst [vmem:[%s5466_s24 + $0x8] sm:$0xff] %v2834_v20  ;;  %2851 = vst [vmem:[%s5466_s24 + $0x10] sm:$0xff] %v2835_v21  ;;  %v2845_v15 = vadd.f32 %v3301_v19, %v2822_v56  ;;  %v2846_v24 = vadd.f32 %v3301_v19, %v2823_v29  ;;  %v2847_v12 = vadd.f32 %v3301_v19, %v2824_v23 }
 0x314   : > { %2852 = vst [vmem:[%s5466_s24 + $0x18] sm:$0xff] %v2836_v31  ;;  %v2848_v57 = vadd.f32 %v3301_v19, %v2825_v47  ;;  %2853 = vst [vmem:[%s5466_s24 + $0x20] sm:$0xff] %v2837_v10 }
 0x315   : > { %2854 = vst [vmem:[%s5466_s24 + $0x28] sm:$0xff] %v2838_v14  ;;  %2855 = vst [vmem:[%s5466_s24 + $0x30] sm:$0xff] %v2839_v50 }
 0x316   : > { %2856 = vst [vmem:[%s5466_s24 + $0x38] sm:$0xff] %v2840_v18  ;;  %2857 = vst [vmem:[%s5466_s24 + $0x40] sm:$0xff] %v2841_v61 }
 0x317   : > { %2858 = vst [vmem:[%s5466_s24 + $0x48] sm:$0xff] %v2842_v35  ;;  %2859 = vst [vmem:[%s5466_s24 + $0x50] sm:$0xff] %v2843_v53 }
 0x318   : > { %2860 = vst [vmem:[%s5466_s24 + $0x58] sm:$0xff] %v2844_v0  ;;  %2861 = vst [vmem:[%s5466_s24 + $0x60] sm:$0xff] %v2845_v15 }
 0x319   : > { %2862 = vst [vmem:[%s5466_s24 + $0x68] sm:$0xff] %v2846_v24  ;;  %2863 = vst [vmem:[%s5466_s24 + $0x70] sm:$0xff] %v2847_v12 }
 0x31a   : > { %2864 = vst [vmem:[%s5466_s24 + $0x78] sm:$0xff] %v2848_v57 }
 0x31b PF: > { %s16_s21 = sadd.s32 1, %s3848_s21  }
 0x31c   : > { %p13_p4 = scmp.ge.s32.totalorder %s16_s21, 4  }
 0x31e   :  { %15 = sbr.rel (!%p13_p4) target bundleno = 1 (0x1), region = 97 }

</bundles_post_ra>
